<compile_context>
chip_gen: v6e
topology: v6e:2x2x1
jax: 0.10.0
libtpu: 0.0.40
codegen_flags: <defaults>
</compile_context>

<pallas_src>
import functools

import jax
import jax.numpy as jnp
from jax import lax
from jax.experimental import pallas as pl
from jax.experimental.pallas import tpu as pltpu


def _res_block_kernel(x_ref, w1_ref, w2_ref, fc1t_ref, fc2_ref, out_ref,
                      *, H, W, C, NB, dil):
    """Fused residual block for NB images per grid step.

      x_ref    : (NB, C, H*W)  input images (NCHW with spatial flattened onto lanes)
      w1_ref   : (9, C, C)     conv1 weights, tap-leading: w1_ref[t][out_ch, in_ch]
      w2_ref   : (9, C, C)     conv2 weights, same layout
      fc1t_ref : (C, C//r)     SE fc1 weight transposed to (in, out)
      fc2_ref  : (C, C//r)     SE fc2 weight, native (out, in)
      out_ref  : (NB, C, H*W)  se(conv2(relu(conv1(x)))) + x
    """
    HW = H * W
    L = NB * HW

    # ---- lane coordinates + the 9 border masks: built ONCE, reused by both convs.
    flat = lax.broadcasted_iota(jnp.int32, (1, L), 1)
    if (W & (W - 1)) == 0 and (H & (H - 1)) == 0:          # power-of-two H, W: bit ops
        w_idx = jnp.bitwise_and(flat, W - 1)
        h_idx = jnp.bitwise_and(jnp.right_shift(flat, W.bit_length() - 1), H - 1)
    else:
        w_idx = flat % W
        h_idx = (flat // W) % H                            # mod H: row within *its* image

    taps = []                                              # [(flat_offset, mask | None)]
    for ky in range(3):
        for kx in range(3):
            dy = (ky - 1) * dil
            dx = (kx - 1) * dil
            conds = []
            if dy > 0:
                conds.append(h_idx < (H - dy))
            elif dy < 0:
                conds.append(h_idx >= (-dy))
            if dx > 0:
                conds.append(w_idx < (W - dx))
            elif dx < 0:
                conds.append(w_idx >= (-dx))
            mask = None
            if conds:
                mask = conds[0]
                for c in conds[1:]:
                    mask = mask & c
            taps.append((dy * W + dx, mask))

    def dconv(a, w_ref):
        """Dilated 3x3 conv as 9 per-tap accumulating MXU dots (f32 accumulator).

        Each (C, L) tap piece is a lane roll (+ static border mask) of `a` fed
        straight from vregs to the MXU; no (9C, L) im2col is ever materialized.
        The border masks also kill any cross-image leakage when NB > 1.
        """
        acc = None
        for t, (off, mask) in enumerate(taps):
            piece = a if off == 0 else jnp.roll(a, -off, axis=1)   # lane rotate (XLU)
            if mask is not None:
                piece = jnp.where(mask, piece, 0.0)
            d = jnp.dot(w_ref[t], piece, preferred_element_type=jnp.float32)
            acc = d if acc is None else acc + d
        return acc

    # ---- load x; for NB > 1 flatten the batch onto the lane axis (aligned concat).
    if NB == 1:
        x = x_ref[0]
    else:
        x = jnp.concatenate([x_ref[i] for i in range(NB)], axis=1)  # (C, NB*HW)

    h1 = jnp.maximum(dconv(x, w1_ref), 0.0)                # conv1 + ReLU
    h2 = dconv(h1, w2_ref)                                 # conv2

    # ---- SE layer + residual add, per image (tiny VPU work; h2 stays in vregs).
    fc1t = fc1t_ref[...]
    fc2 = fc2_ref[...]
    inv_hw = 1.0 / HW
    for i in range(NB):
        h2_i = h2 if NB == 1 else h2[:, i * HW:(i + 1) * HW]            # (C, HW)
        y = jnp.sum(h2_i, axis=1, keepdims=True) * inv_hw               # avg-pool (C, 1)
        t1 = jnp.maximum(jnp.sum(fc1t * y, axis=0, keepdims=True), 0.0)  # relu(fc1@y) (1, C//r)
        z = jnp.sum(fc2 * t1, axis=1, keepdims=True)                    # fc2@t1     (C, 1)
        scale = 1.0 / (1.0 + jnp.exp(-z))                  # exact sigmoid (exp on EUP)
        # channel-wise scale + residual; one lane-dense unmasked (C, HW) store per image.
        out_ref[i] = (h2_i * scale + x_ref[i]).astype(out_ref.dtype)


def prepare_params(w1_oihw, w2_oihw, fc1_w, fc2_w):
    """One-time fold of the module parameters into kernel layouts.

    Hoisted out of the forward path (per review) so the transposes/reshapes are
    not re-launched on every call.
      w*_oihw : (C, C, 3, 3) -> (9, C, C) tap-leading, w_taps[ky*3+kx] = w[:, :, ky, kx]
      fc1_w   : (C//r, C)    -> (C, C//r) transposed
    """
    C = w1_oihw.shape[0]
    w1_taps = jnp.transpose(w1_oihw, (2, 3, 0, 1)).reshape(9, C, C)
    w2_taps = jnp.transpose(w2_oihw, (2, 3, 0, 1)).reshape(9, C, C)
    fc1_t = jnp.transpose(fc1_w)
    return w1_taps, w2_taps, fc1_t, fc2_w


def _default_images_per_step(n_batch, hw):
    """v7x (2 TensorCores/chip): one image per grid step so the 'parallel' batch
    axis spans both cores.  Single-TC chips (v5e/v6e): flatten the batch onto the
    lane axis in one wide step (capped so per-tap pieces stay vreg-resident)."""
    try:
        kind = jax.devices()[0].device_kind.lower()
    except Exception:
        return 1
    if "v7" in kind:
        return 1
    nb = max(1, min(n_batch, 512 // hw))
    while n_batch % nb:
        nb -= 1
    return nb


@functools.partial(jax.jit, static_argnames=("dilation", "images_per_step"))
def residual_block_enhance_forward(x_nchw, w1_taps, w2_taps, fc1_t, fc2_w, *,
                                   dilation=1, images_per_step=None):
    """Residual_Block_Enhance.forward on pre-folded params (see prepare_params)."""
    N, C, H, W = x_nchw.shape
    Cred = fc1_t.shape[1]
    assert w1_taps.shape == (9, C, C) and w2_taps.shape == (9, C, C)
    assert fc1_t.shape == (C, Cred) and fc2_w.shape == (C, Cred)
    assert 0 < dilation < H and dilation < W            # border masks assume this
    HW = H * W

    NB = images_per_step
    if NB is None:
        NB = _default_images_per_step(N, HW)
    assert N % NB == 0

    x2d = x_nchw.reshape(N, C, HW)                       # contiguous: no data movement
    kernel = functools.partial(_res_block_kernel, H=H, W=W, C=C, NB=NB, dil=dilation)

    out2d = pl.pallas_call(
        kernel,
        out_shape=jax.ShapeDtypeStruct((N, C, HW), x_nchw.dtype),
        grid_spec=pltpu.PrefetchScalarGridSpec(
            num_scalar_prefetch=0,
            grid=(N // NB,),
            in_specs=[
                pl.BlockSpec((NB, C, HW), lambda g: (g, 0, 0)),
                pl.BlockSpec((9, C, C), lambda g: (0, 0, 0)),
                pl.BlockSpec((9, C, C), lambda g: (0, 0, 0)),
                pl.BlockSpec((C, Cred), lambda g: (0, 0)),
                pl.BlockSpec((C, Cred), lambda g: (0, 0)),
            ],
            out_specs=pl.BlockSpec((NB, C, HW), lambda g: (g, 0, 0)),
        ),
        compiler_params=pltpu.CompilerParams(
            # one image per step -> batch across TensorCores on v7x;
            # batch-in-lanes (NB == N) -> single step, semantics moot.
            dimension_semantics=("parallel",) if NB == 1 else ("arbitrary",),
        ),
    )(x2d, w1_taps, w2_taps, fc1_t, fc2_w)

    return out2d.reshape(N, C, H, W)


def _reference_forward(x, w1, w2, fc1_w, fc2_w, dilation):
    """Pure-JAX reference mirroring the PyTorch forward()."""
    def conv(inp, w):
        return lax.conv_general_dilated(
            inp, w, window_strides=(1, 1),
            padding=[(dilation, dilation), (dilation, dilation)],
            rhs_dilation=(dilation, dilation),
            dimension_numbers=("NCHW", "OIHW", "NCHW"))
    h1 = jnp.maximum(conv(x, w1), 0.0)
    h2 = conv(h1, w2)
    y = jnp.mean(h2, axis=(2, 3))                        # (N, C)
    y = jnp.maximum(y @ fc1_w.T, 0.0)                    # (N, C//r)
    y = jax.nn.sigmoid(y @ fc2_w.T)                      # (N, C)
    return h2 * y[:, :, None, None] + x


if __name__ == "__main__":
    # Residual_Block_Enhance(in_num=32, out_num=32, dilation_factor=d); SELayer reduction=16.
    N, C, H, W = 2, 32, 16, 16
    reduction = 16
    Cred = C // reduction

    key = jax.random.PRNGKey(0)
    k1, k2, k3, k4, k5 = jax.random.split(key, 5)
    x = jax.random.normal(k1, (N, C, H, W), dtype=jnp.float32)
    fan = C * 3 * 3
    w1 = jax.random.normal(k2, (C, C, 3, 3), dtype=jnp.float32) * (2.0 / fan) ** 0.5
    w2 = jax.random.normal(k3, (C, C, 3, 3), dtype=jnp.float32) * (2.0 / fan) ** 0.5
    fc1 = jax.random.normal(k4, (Cred, C), dtype=jnp.float32) * (1.0 / C) ** 0.5
    fc2 = jax.random.normal(k5, (C, Cred), dtype=jnp.float32) * (1.0 / Cred) ** 0.5

    params = prepare_params(w1, w2, fc1, fc2)            # one-time weight fold

    for dil in (1, 2):                                   # plain and dilated conv paths
        ref = jax.block_until_ready(_reference_forward(x, w1, w2, fc1, fc2, dil))
        for nb in (1, 2):                                # v7x path (1/step) and batch-in-lanes path
            out = jax.block_until_ready(
                residual_block_enhance_forward(x, *params, dilation=dil,
                                               images_per_step=nb))
            assert out.shape == (N, C, H, W), out.shape
            err = float(jnp.max(jnp.abs(out - ref)))
            assert jnp.allclose(out, ref, atol=1e-4, rtol=1e-4), \
                f"mismatch vs reference (dilation={dil}, images_per_step={nb}): max|diff|={err}"

    # default path: images_per_step auto-selected from the detected TPU generation
    jax.block_until_ready(residual_block_enhance_forward(x, *params, dilation=1))

    print("KERNEL_OK")
</pallas_src>

<mosaic_0001>
module attributes {stable_mosaic.version = 11 : i64} {
  func.func @_res_block_kernel(%arg0: i32, %arg1: memref<1x32x256xf32, #tpu.memory_space<vmem>>, %arg2: memref<9x32x32xf32, #tpu.memory_space<vmem>>, %arg3: memref<9x32x32xf32, #tpu.memory_space<vmem>>, %arg4: memref<32x2xf32, #tpu.memory_space<vmem>>, %arg5: memref<32x2xf32, #tpu.memory_space<vmem>>, %arg6: memref<1x32x256xf32, #tpu.memory_space<vmem>>) attributes {dimension_semantics = [#tpu.dimension_semantics<parallel>], iteration_bounds = array<i64: 2>, scalar_prefetch = 0 : i64, scratch_operands = 0 : i64, tpu.core_type = #tpu.core_type<tc>, window_params = [{transform_indices = @transform_0, window_bounds = array<i64: 1, 32, 256>}, {pipeline_mode = #tpu.pipeline_mode<synchronous>, transform_indices = @transform_1, window_bounds = array<i64: 9, 32, 32>}, {pipeline_mode = #tpu.pipeline_mode<synchronous>, transform_indices = @transform_2, window_bounds = array<i64: 9, 32, 32>}, {pipeline_mode = #tpu.pipeline_mode<synchronous>, transform_indices = @transform_3, window_bounds = array<i64: 32, 2>}, {pipeline_mode = #tpu.pipeline_mode<synchronous>, transform_indices = @transform_4, window_bounds = array<i64: 32, 2>}, {transform_indices = @transform_5, window_bounds = array<i64: 1, 32, 256>}]} {
    %0 = tpu.iota {dimensions = array<i32: 1>} : vector<1x256xi32>
    %c15_i32 = arith.constant 15 : i32
    %1 = vector.broadcast %c15_i32 : i32 to vector<1x256xi32>
    %2 = arith.andi %0, %1 : vector<1x256xi32>
    %c4_i32 = arith.constant 4 : i32
    %3 = vector.broadcast %c4_i32 : i32 to vector<1x256xi32>
    %4 = arith.shrsi %0, %3 : vector<1x256xi32>
    %c15_i32_0 = arith.constant 15 : i32
    %5 = vector.broadcast %c15_i32_0 : i32 to vector<1x256xi32>
    %6 = arith.andi %4, %5 : vector<1x256xi32>
    %c1_i32 = arith.constant 1 : i32
    %7 = vector.broadcast %c1_i32 : i32 to vector<1x256xi32>
    %8 = arith.cmpi sge, %6, %7 : vector<1x256xi32>
    %c1_i32_1 = arith.constant 1 : i32
    %9 = vector.broadcast %c1_i32_1 : i32 to vector<1x256xi32>
    %10 = arith.cmpi sge, %2, %9 : vector<1x256xi32>
    %11 = arith.andi %8, %10 : vector<1x256xi1>
    %c1_i32_2 = arith.constant 1 : i32
    %12 = vector.broadcast %c1_i32_2 : i32 to vector<1x256xi32>
    %13 = arith.cmpi sge, %6, %12 : vector<1x256xi32>
    %c1_i32_3 = arith.constant 1 : i32
    %14 = vector.broadcast %c1_i32_3 : i32 to vector<1x256xi32>
    %15 = arith.cmpi sge, %6, %14 : vector<1x256xi32>
    %c15_i32_4 = arith.constant 15 : i32
    %16 = vector.broadcast %c15_i32_4 : i32 to vector<1x256xi32>
    %17 = arith.cmpi slt, %2, %16 : vector<1x256xi32>
    %18 = arith.andi %15, %17 : vector<1x256xi1>
    %c1_i32_5 = arith.constant 1 : i32
    %19 = vector.broadcast %c1_i32_5 : i32 to vector<1x256xi32>
    %20 = arith.cmpi sge, %2, %19 : vector<1x256xi32>
    %c15_i32_6 = arith.constant 15 : i32
    %21 = vector.broadcast %c15_i32_6 : i32 to vector<1x256xi32>
    %22 = arith.cmpi slt, %2, %21 : vector<1x256xi32>
    %c15_i32_7 = arith.constant 15 : i32
    %23 = vector.broadcast %c15_i32_7 : i32 to vector<1x256xi32>
    %24 = arith.cmpi slt, %6, %23 : vector<1x256xi32>
    %c1_i32_8 = arith.constant 1 : i32
    %25 = vector.broadcast %c1_i32_8 : i32 to vector<1x256xi32>
    %26 = arith.cmpi sge, %2, %25 : vector<1x256xi32>
    %27 = arith.andi %24, %26 : vector<1x256xi1>
    %c15_i32_9 = arith.constant 15 : i32
    %28 = vector.broadcast %c15_i32_9 : i32 to vector<1x256xi32>
    %29 = arith.cmpi slt, %6, %28 : vector<1x256xi32>
    %c15_i32_10 = arith.constant 15 : i32
    %30 = vector.broadcast %c15_i32_10 : i32 to vector<1x256xi32>
    %31 = arith.cmpi slt, %6, %30 : vector<1x256xi32>
    %c15_i32_11 = arith.constant 15 : i32
    %32 = vector.broadcast %c15_i32_11 : i32 to vector<1x256xi32>
    %33 = arith.cmpi slt, %2, %32 : vector<1x256xi32>
    %34 = arith.andi %31, %33 : vector<1x256xi1>
    %c0 = arith.constant 0 : index
    %c0_12 = arith.constant 0 : index
    %c0_13 = arith.constant 0 : index
    %35 = vector.load %arg1[%c0, %c0_12, %c0_13] : memref<1x32x256xf32, #tpu.memory_space<vmem>>, vector<1x32x256xf32>
    %36 = vector.shape_cast %35 : vector<1x32x256xf32> to vector<32x256xf32>
    %37 = vector.extract_strided_slice %36 {offsets = [0, 239], sizes = [32, 17], strides = [1, 1]} : vector<32x256xf32> to vector<32x17xf32>
    %38 = vector.extract_strided_slice %36 {offsets = [0, 0], sizes = [32, 239], strides = [1, 1]} : vector<32x256xf32> to vector<32x239xf32>
    %39 = tpu.concatenate %37, %38 in 1 : vector<32x17xf32>, vector<32x239xf32> -> vector<32x256xf32>
    %cst = arith.constant 0.000000e+00 : f32
    %40 = vector.shape_cast %11 : vector<1x256xi1> to vector<1x256xi1>
    %41 = vector.broadcast %40 : vector<1x256xi1> to vector<32x256xi1>
    %42 = vector.broadcast %cst : f32 to vector<32x256xf32>
    %43 = arith.select %41, %39, %42 : vector<32x256xi1>, vector<32x256xf32>
    %c0_14 = arith.constant 0 : index
    %c0_15 = arith.constant 0 : index
    %c0_16 = arith.constant 0 : index
    %44 = vector.load %arg2[%c0_14, %c0_15, %c0_16] : memref<9x32x32xf32, #tpu.memory_space<vmem>>, vector<1x32x32xf32>
    %45 = vector.shape_cast %44 : vector<1x32x32xf32> to vector<32x32xf32>
    %cst_17 = arith.constant dense<0.000000e+00> : vector<32x256xf32>
    %46 = tpu.matmul %45, %43, %cst_17 {dimension_numbers = #tpu.dot_dimension_numbers<[1], [0], [0], [1], [0, 0, 1, 1], [], []>} : vector<32x32xf32>, vector<32x256xf32>, vector<32x256xf32> -> vector<32x256xf32>
    %47 = vector.extract_strided_slice %36 {offsets = [0, 240], sizes = [32, 16], strides = [1, 1]} : vector<32x256xf32> to vector<32x16xf32>
    %48 = vector.extract_strided_slice %36 {offsets = [0, 0], sizes = [32, 240], strides = [1, 1]} : vector<32x256xf32> to vector<32x240xf32>
    %49 = tpu.concatenate %47, %48 in 1 : vector<32x16xf32>, vector<32x240xf32> -> vector<32x256xf32>
    %cst_18 = arith.constant 0.000000e+00 : f32
    %50 = vector.shape_cast %13 : vector<1x256xi1> to vector<1x256xi1>
    %51 = vector.broadcast %50 : vector<1x256xi1> to vector<32x256xi1>
    %52 = vector.broadcast %cst_18 : f32 to vector<32x256xf32>
    %53 = arith.select %51, %49, %52 : vector<32x256xi1>, vector<32x256xf32>
    %c1 = arith.constant 1 : index
    %c0_19 = arith.constant 0 : index
    %c0_20 = arith.constant 0 : index
    %54 = vector.load %arg2[%c1, %c0_19, %c0_20] : memref<9x32x32xf32, #tpu.memory_space<vmem>>, vector<1x32x32xf32>
    %55 = vector.shape_cast %54 : vector<1x32x32xf32> to vector<32x32xf32>
    %cst_21 = arith.constant dense<0.000000e+00> : vector<32x256xf32>
    %56 = tpu.matmul %55, %53, %cst_21 {dimension_numbers = #tpu.dot_dimension_numbers<[1], [0], [0], [1], [0, 0, 1, 1], [], []>} : vector<32x32xf32>, vector<32x256xf32>, vector<32x256xf32> -> vector<32x256xf32>
    %57 = arith.addf %46, %56 : vector<32x256xf32>
    %58 = vector.extract_strided_slice %36 {offsets = [0, 241], sizes = [32, 15], strides = [1, 1]} : vector<32x256xf32> to vector<32x15xf32>
    %59 = vector.extract_strided_slice %36 {offsets = [0, 0], sizes = [32, 241], strides = [1, 1]} : vector<32x256xf32> to vector<32x241xf32>
    %60 = tpu.concatenate %58, %59 in 1 : vector<32x15xf32>, vector<32x241xf32> -> vector<32x256xf32>
    %cst_22 = arith.constant 0.000000e+00 : f32
    %61 = vector.shape_cast %18 : vector<1x256xi1> to vector<1x256xi1>
    %62 = vector.broadcast %61 : vector<1x256xi1> to vector<32x256xi1>
    %63 = vector.broadcast %cst_22 : f32 to vector<32x256xf32>
    %64 = arith.select %62, %60, %63 : vector<32x256xi1>, vector<32x256xf32>
    %c2 = arith.constant 2 : index
    %c0_23 = arith.constant 0 : index
    %c0_24 = arith.constant 0 : index
    %65 = vector.load %arg2[%c2, %c0_23, %c0_24] : memref<9x32x32xf32, #tpu.memory_space<vmem>>, vector<1x32x32xf32>
    %66 = vector.shape_cast %65 : vector<1x32x32xf32> to vector<32x32xf32>
    %cst_25 = arith.constant dense<0.000000e+00> : vector<32x256xf32>
    %67 = tpu.matmul %66, %64, %cst_25 {dimension_numbers = #tpu.dot_dimension_numbers<[1], [0], [0], [1], [0, 0, 1, 1], [], []>} : vector<32x32xf32>, vector<32x256xf32>, vector<32x256xf32> -> vector<32x256xf32>
    %68 = arith.addf %57, %67 : vector<32x256xf32>
    %69 = vector.extract_strided_slice %36 {offsets = [0, 255], sizes = [32, 1], strides = [1, 1]} : vector<32x256xf32> to vector<32x1xf32>
    %70 = vector.extract_strided_slice %36 {offsets = [0, 0], sizes = [32, 255], strides = [1, 1]} : vector<32x256xf32> to vector<32x255xf32>
    %71 = tpu.concatenate %69, %70 in 1 : vector<32x1xf32>, vector<32x255xf32> -> vector<32x256xf32>
    %cst_26 = arith.constant 0.000000e+00 : f32
    %72 = vector.shape_cast %20 : vector<1x256xi1> to vector<1x256xi1>
    %73 = vector.broadcast %72 : vector<1x256xi1> to vector<32x256xi1>
    %74 = vector.broadcast %cst_26 : f32 to vector<32x256xf32>
    %75 = arith.select %73, %71, %74 : vector<32x256xi1>, vector<32x256xf32>
    %c3 = arith.constant 3 : index
    %c0_27 = arith.constant 0 : index
    %c0_28 = arith.constant 0 : index
    %76 = vector.load %arg2[%c3, %c0_27, %c0_28] : memref<9x32x32xf32, #tpu.memory_space<vmem>>, vector<1x32x32xf32>
    %77 = vector.shape_cast %76 : vector<1x32x32xf32> to vector<32x32xf32>
    %cst_29 = arith.constant dense<0.000000e+00> : vector<32x256xf32>
    %78 = tpu.matmul %77, %75, %cst_29 {dimension_numbers = #tpu.dot_dimension_numbers<[1], [0], [0], [1], [0, 0, 1, 1], [], []>} : vector<32x32xf32>, vector<32x256xf32>, vector<32x256xf32> -> vector<32x256xf32>
    %79 = arith.addf %68, %78 : vector<32x256xf32>
    %c4 = arith.constant 4 : index
    %c0_30 = arith.constant 0 : index
    %c0_31 = arith.constant 0 : index
    %80 = vector.load %arg2[%c4, %c0_30, %c0_31] : memref<9x32x32xf32, #tpu.memory_space<vmem>>, vector<1x32x32xf32>
    %81 = vector.shape_cast %80 : vector<1x32x32xf32> to vector<32x32xf32>
    %cst_32 = arith.constant dense<0.000000e+00> : vector<32x256xf32>
    %82 = tpu.matmul %81, %36, %cst_32 {dimension_numbers = #tpu.dot_dimension_numbers<[1], [0], [0], [1], [0, 0, 1, 1], [], []>} : vector<32x32xf32>, vector<32x256xf32>, vector<32x256xf32> -> vector<32x256xf32>
    %83 = arith.addf %79, %82 : vector<32x256xf32>
    %84 = vector.extract_strided_slice %36 {offsets = [0, 1], sizes = [32, 255], strides = [1, 1]} : vector<32x256xf32> to vector<32x255xf32>
    %85 = vector.extract_strided_slice %36 {offsets = [0, 0], sizes = [32, 1], strides = [1, 1]} : vector<32x256xf32> to vector<32x1xf32>
    %86 = tpu.concatenate %84, %85 in 1 : vector<32x255xf32>, vector<32x1xf32> -> vector<32x256xf32>
    %cst_33 = arith.constant 0.000000e+00 : f32
    %87 = vector.shape_cast %22 : vector<1x256xi1> to vector<1x256xi1>
    %88 = vector.broadcast %87 : vector<1x256xi1> to vector<32x256xi1>
    %89 = vector.broadcast %cst_33 : f32 to vector<32x256xf32>
    %90 = arith.select %88, %86, %89 : vector<32x256xi1>, vector<32x256xf32>
    %c5 = arith.constant 5 : index
    %c0_34 = arith.constant 0 : index
    %c0_35 = arith.constant 0 : index
    %91 = vector.load %arg2[%c5, %c0_34, %c0_35] : memref<9x32x32xf32, #tpu.memory_space<vmem>>, vector<1x32x32xf32>
    %92 = vector.shape_cast %91 : vector<1x32x32xf32> to vector<32x32xf32>
    %cst_36 = arith.constant dense<0.000000e+00> : vector<32x256xf32>
    %93 = tpu.matmul %92, %90, %cst_36 {dimension_numbers = #tpu.dot_dimension_numbers<[1], [0], [0], [1], [0, 0, 1, 1], [], []>} : vector<32x32xf32>, vector<32x256xf32>, vector<32x256xf32> -> vector<32x256xf32>
    %94 = arith.addf %83, %93 : vector<32x256xf32>
    %95 = vector.extract_strided_slice %36 {offsets = [0, 15], sizes = [32, 241], strides = [1, 1]} : vector<32x256xf32> to vector<32x241xf32>
    %96 = vector.extract_strided_slice %36 {offsets = [0, 0], sizes = [32, 15], strides = [1, 1]} : vector<32x256xf32> to vector<32x15xf32>
    %97 = tpu.concatenate %95, %96 in 1 : vector<32x241xf32>, vector<32x15xf32> -> vector<32x256xf32>
    %cst_37 = arith.constant 0.000000e+00 : f32
    %98 = vector.shape_cast %27 : vector<1x256xi1> to vector<1x256xi1>
    %99 = vector.broadcast %98 : vector<1x256xi1> to vector<32x256xi1>
    %100 = vector.broadcast %cst_37 : f32 to vector<32x256xf32>
    %101 = arith.select %99, %97, %100 : vector<32x256xi1>, vector<32x256xf32>
    %c6 = arith.constant 6 : index
    %c0_38 = arith.constant 0 : index
    %c0_39 = arith.constant 0 : index
    %102 = vector.load %arg2[%c6, %c0_38, %c0_39] : memref<9x32x32xf32, #tpu.memory_space<vmem>>, vector<1x32x32xf32>
    %103 = vector.shape_cast %102 : vector<1x32x32xf32> to vector<32x32xf32>
    %cst_40 = arith.constant dense<0.000000e+00> : vector<32x256xf32>
    %104 = tpu.matmul %103, %101, %cst_40 {dimension_numbers = #tpu.dot_dimension_numbers<[1], [0], [0], [1], [0, 0, 1, 1], [], []>} : vector<32x32xf32>, vector<32x256xf32>, vector<32x256xf32> -> vector<32x256xf32>
    %105 = arith.addf %94, %104 : vector<32x256xf32>
    %106 = vector.extract_strided_slice %36 {offsets = [0, 16], sizes = [32, 240], strides = [1, 1]} : vector<32x256xf32> to vector<32x240xf32>
    %107 = vector.extract_strided_slice %36 {offsets = [0, 0], sizes = [32, 16], strides = [1, 1]} : vector<32x256xf32> to vector<32x16xf32>
    %108 = tpu.concatenate %106, %107 in 1 : vector<32x240xf32>, vector<32x16xf32> -> vector<32x256xf32>
    %cst_41 = arith.constant 0.000000e+00 : f32
    %109 = vector.shape_cast %29 : vector<1x256xi1> to vector<1x256xi1>
    %110 = vector.broadcast %109 : vector<1x256xi1> to vector<32x256xi1>
    %111 = vector.broadcast %cst_41 : f32 to vector<32x256xf32>
    %112 = arith.select %110, %108, %111 : vector<32x256xi1>, vector<32x256xf32>
    %c7 = arith.constant 7 : index
    %c0_42 = arith.constant 0 : index
    %c0_43 = arith.constant 0 : index
    %113 = vector.load %arg2[%c7, %c0_42, %c0_43] : memref<9x32x32xf32, #tpu.memory_space<vmem>>, vector<1x32x32xf32>
    %114 = vector.shape_cast %113 : vector<1x32x32xf32> to vector<32x32xf32>
    %cst_44 = arith.constant dense<0.000000e+00> : vector<32x256xf32>
    %115 = tpu.matmul %114, %112, %cst_44 {dimension_numbers = #tpu.dot_dimension_numbers<[1], [0], [0], [1], [0, 0, 1, 1], [], []>} : vector<32x32xf32>, vector<32x256xf32>, vector<32x256xf32> -> vector<32x256xf32>
    %116 = arith.addf %105, %115 : vector<32x256xf32>
    %117 = vector.extract_strided_slice %36 {offsets = [0, 17], sizes = [32, 239], strides = [1, 1]} : vector<32x256xf32> to vector<32x239xf32>
    %118 = vector.extract_strided_slice %36 {offsets = [0, 0], sizes = [32, 17], strides = [1, 1]} : vector<32x256xf32> to vector<32x17xf32>
    %119 = tpu.concatenate %117, %118 in 1 : vector<32x239xf32>, vector<32x17xf32> -> vector<32x256xf32>
    %cst_45 = arith.constant 0.000000e+00 : f32
    %120 = vector.shape_cast %34 : vector<1x256xi1> to vector<1x256xi1>
    %121 = vector.broadcast %120 : vector<1x256xi1> to vector<32x256xi1>
    %122 = vector.broadcast %cst_45 : f32 to vector<32x256xf32>
    %123 = arith.select %121, %119, %122 : vector<32x256xi1>, vector<32x256xf32>
    %c8 = arith.constant 8 : index
    %c0_46 = arith.constant 0 : index
    %c0_47 = arith.constant 0 : index
    %124 = vector.load %arg2[%c8, %c0_46, %c0_47] : memref<9x32x32xf32, #tpu.memory_space<vmem>>, vector<1x32x32xf32>
    %125 = vector.shape_cast %124 : vector<1x32x32xf32> to vector<32x32xf32>
    %cst_48 = arith.constant dense<0.000000e+00> : vector<32x256xf32>
    %126 = tpu.matmul %125, %123, %cst_48 {dimension_numbers = #tpu.dot_dimension_numbers<[1], [0], [0], [1], [0, 0, 1, 1], [], []>} : vector<32x32xf32>, vector<32x256xf32>, vector<32x256xf32> -> vector<32x256xf32>
    %127 = arith.addf %116, %126 : vector<32x256xf32>
    %cst_49 = arith.constant 0.000000e+00 : f32
    %128 = vector.broadcast %cst_49 : f32 to vector<32x256xf32>
    %129 = arith.maximumf %127, %128 : vector<32x256xf32>
    %130 = vector.extract_strided_slice %129 {offsets = [0, 239], sizes = [32, 17], strides = [1, 1]} : vector<32x256xf32> to vector<32x17xf32>
    %131 = vector.extract_strided_slice %129 {offsets = [0, 0], sizes = [32, 239], strides = [1, 1]} : vector<32x256xf32> to vector<32x239xf32>
    %132 = tpu.concatenate %130, %131 in 1 : vector<32x17xf32>, vector<32x239xf32> -> vector<32x256xf32>
    %cst_50 = arith.constant 0.000000e+00 : f32
    %133 = vector.shape_cast %11 : vector<1x256xi1> to vector<1x256xi1>
    %134 = vector.broadcast %133 : vector<1x256xi1> to vector<32x256xi1>
    %135 = vector.broadcast %cst_50 : f32 to vector<32x256xf32>
    %136 = arith.select %134, %132, %135 : vector<32x256xi1>, vector<32x256xf32>
    %c0_51 = arith.constant 0 : index
    %c0_52 = arith.constant 0 : index
    %c0_53 = arith.constant 0 : index
    %137 = vector.load %arg3[%c0_51, %c0_52, %c0_53] : memref<9x32x32xf32, #tpu.memory_space<vmem>>, vector<1x32x32xf32>
    %138 = vector.shape_cast %137 : vector<1x32x32xf32> to vector<32x32xf32>
    %cst_54 = arith.constant dense<0.000000e+00> : vector<32x256xf32>
    %139 = tpu.matmul %138, %136, %cst_54 {dimension_numbers = #tpu.dot_dimension_numbers<[1], [0], [0], [1], [0, 0, 1, 1], [], []>} : vector<32x32xf32>, vector<32x256xf32>, vector<32x256xf32> -> vector<32x256xf32>
    %140 = vector.extract_strided_slice %129 {offsets = [0, 240], sizes = [32, 16], strides = [1, 1]} : vector<32x256xf32> to vector<32x16xf32>
    %141 = vector.extract_strided_slice %129 {offsets = [0, 0], sizes = [32, 240], strides = [1, 1]} : vector<32x256xf32> to vector<32x240xf32>
    %142 = tpu.concatenate %140, %141 in 1 : vector<32x16xf32>, vector<32x240xf32> -> vector<32x256xf32>
    %cst_55 = arith.constant 0.000000e+00 : f32
    %143 = vector.shape_cast %13 : vector<1x256xi1> to vector<1x256xi1>
    %144 = vector.broadcast %143 : vector<1x256xi1> to vector<32x256xi1>
    %145 = vector.broadcast %cst_55 : f32 to vector<32x256xf32>
    %146 = arith.select %144, %142, %145 : vector<32x256xi1>, vector<32x256xf32>
    %c1_56 = arith.constant 1 : index
    %c0_57 = arith.constant 0 : index
    %c0_58 = arith.constant 0 : index
    %147 = vector.load %arg3[%c1_56, %c0_57, %c0_58] : memref<9x32x32xf32, #tpu.memory_space<vmem>>, vector<1x32x32xf32>
    %148 = vector.shape_cast %147 : vector<1x32x32xf32> to vector<32x32xf32>
    %cst_59 = arith.constant dense<0.000000e+00> : vector<32x256xf32>
    %149 = tpu.matmul %148, %146, %cst_59 {dimension_numbers = #tpu.dot_dimension_numbers<[1], [0], [0], [1], [0, 0, 1, 1], [], []>} : vector<32x32xf32>, vector<32x256xf32>, vector<32x256xf32> -> vector<32x256xf32>
    %150 = arith.addf %139, %149 : vector<32x256xf32>
    %151 = vector.extract_strided_slice %129 {offsets = [0, 241], sizes = [32, 15], strides = [1, 1]} : vector<32x256xf32> to vector<32x15xf32>
    %152 = vector.extract_strided_slice %129 {offsets = [0, 0], sizes = [32, 241], strides = [1, 1]} : vector<32x256xf32> to vector<32x241xf32>
    %153 = tpu.concatenate %151, %152 in 1 : vector<32x15xf32>, vector<32x241xf32> -> vector<32x256xf32>
    %cst_60 = arith.constant 0.000000e+00 : f32
    %154 = vector.shape_cast %18 : vector<1x256xi1> to vector<1x256xi1>
    %155 = vector.broadcast %154 : vector<1x256xi1> to vector<32x256xi1>
    %156 = vector.broadcast %cst_60 : f32 to vector<32x256xf32>
    %157 = arith.select %155, %153, %156 : vector<32x256xi1>, vector<32x256xf32>
    %c2_61 = arith.constant 2 : index
    %c0_62 = arith.constant 0 : index
    %c0_63 = arith.constant 0 : index
    %158 = vector.load %arg3[%c2_61, %c0_62, %c0_63] : memref<9x32x32xf32, #tpu.memory_space<vmem>>, vector<1x32x32xf32>
    %159 = vector.shape_cast %158 : vector<1x32x32xf32> to vector<32x32xf32>
    %cst_64 = arith.constant dense<0.000000e+00> : vector<32x256xf32>
    %160 = tpu.matmul %159, %157, %cst_64 {dimension_numbers = #tpu.dot_dimension_numbers<[1], [0], [0], [1], [0, 0, 1, 1], [], []>} : vector<32x32xf32>, vector<32x256xf32>, vector<32x256xf32> -> vector<32x256xf32>
    %161 = arith.addf %150, %160 : vector<32x256xf32>
    %162 = vector.extract_strided_slice %129 {offsets = [0, 255], sizes = [32, 1], strides = [1, 1]} : vector<32x256xf32> to vector<32x1xf32>
    %163 = vector.extract_strided_slice %129 {offsets = [0, 0], sizes = [32, 255], strides = [1, 1]} : vector<32x256xf32> to vector<32x255xf32>
    %164 = tpu.concatenate %162, %163 in 1 : vector<32x1xf32>, vector<32x255xf32> -> vector<32x256xf32>
    %cst_65 = arith.constant 0.000000e+00 : f32
    %165 = vector.shape_cast %20 : vector<1x256xi1> to vector<1x256xi1>
    %166 = vector.broadcast %165 : vector<1x256xi1> to vector<32x256xi1>
    %167 = vector.broadcast %cst_65 : f32 to vector<32x256xf32>
    %168 = arith.select %166, %164, %167 : vector<32x256xi1>, vector<32x256xf32>
    %c3_66 = arith.constant 3 : index
    %c0_67 = arith.constant 0 : index
    %c0_68 = arith.constant 0 : index
    %169 = vector.load %arg3[%c3_66, %c0_67, %c0_68] : memref<9x32x32xf32, #tpu.memory_space<vmem>>, vector<1x32x32xf32>
    %170 = vector.shape_cast %169 : vector<1x32x32xf32> to vector<32x32xf32>
    %cst_69 = arith.constant dense<0.000000e+00> : vector<32x256xf32>
    %171 = tpu.matmul %170, %168, %cst_69 {dimension_numbers = #tpu.dot_dimension_numbers<[1], [0], [0], [1], [0, 0, 1, 1], [], []>} : vector<32x32xf32>, vector<32x256xf32>, vector<32x256xf32> -> vector<32x256xf32>
    %172 = arith.addf %161, %171 : vector<32x256xf32>
    %c4_70 = arith.constant 4 : index
    %c0_71 = arith.constant 0 : index
    %c0_72 = arith.constant 0 : index
    %173 = vector.load %arg3[%c4_70, %c0_71, %c0_72] : memref<9x32x32xf32, #tpu.memory_space<vmem>>, vector<1x32x32xf32>
    %174 = vector.shape_cast %173 : vector<1x32x32xf32> to vector<32x32xf32>
    %cst_73 = arith.constant dense<0.000000e+00> : vector<32x256xf32>
    %175 = tpu.matmul %174, %129, %cst_73 {dimension_numbers = #tpu.dot_dimension_numbers<[1], [0], [0], [1], [0, 0, 1, 1], [], []>} : vector<32x32xf32>, vector<32x256xf32>, vector<32x256xf32> -> vector<32x256xf32>
    %176 = arith.addf %172, %175 : vector<32x256xf32>
    %177 = vector.extract_strided_slice %129 {offsets = [0, 1], sizes = [32, 255], strides = [1, 1]} : vector<32x256xf32> to vector<32x255xf32>
    %178 = vector.extract_strided_slice %129 {offsets = [0, 0], sizes = [32, 1], strides = [1, 1]} : vector<32x256xf32> to vector<32x1xf32>
    %179 = tpu.concatenate %177, %178 in 1 : vector<32x255xf32>, vector<32x1xf32> -> vector<32x256xf32>
    %cst_74 = arith.constant 0.000000e+00 : f32
    %180 = vector.shape_cast %22 : vector<1x256xi1> to vector<1x256xi1>
    %181 = vector.broadcast %180 : vector<1x256xi1> to vector<32x256xi1>
    %182 = vector.broadcast %cst_74 : f32 to vector<32x256xf32>
    %183 = arith.select %181, %179, %182 : vector<32x256xi1>, vector<32x256xf32>
    %c5_75 = arith.constant 5 : index
    %c0_76 = arith.constant 0 : index
    %c0_77 = arith.constant 0 : index
    %184 = vector.load %arg3[%c5_75, %c0_76, %c0_77] : memref<9x32x32xf32, #tpu.memory_space<vmem>>, vector<1x32x32xf32>
    %185 = vector.shape_cast %184 : vector<1x32x32xf32> to vector<32x32xf32>
    %cst_78 = arith.constant dense<0.000000e+00> : vector<32x256xf32>
    %186 = tpu.matmul %185, %183, %cst_78 {dimension_numbers = #tpu.dot_dimension_numbers<[1], [0], [0], [1], [0, 0, 1, 1], [], []>} : vector<32x32xf32>, vector<32x256xf32>, vector<32x256xf32> -> vector<32x256xf32>
    %187 = arith.addf %176, %186 : vector<32x256xf32>
    %188 = vector.extract_strided_slice %129 {offsets = [0, 15], sizes = [32, 241], strides = [1, 1]} : vector<32x256xf32> to vector<32x241xf32>
    %189 = vector.extract_strided_slice %129 {offsets = [0, 0], sizes = [32, 15], strides = [1, 1]} : vector<32x256xf32> to vector<32x15xf32>
    %190 = tpu.concatenate %188, %189 in 1 : vector<32x241xf32>, vector<32x15xf32> -> vector<32x256xf32>
    %cst_79 = arith.constant 0.000000e+00 : f32
    %191 = vector.shape_cast %27 : vector<1x256xi1> to vector<1x256xi1>
    %192 = vector.broadcast %191 : vector<1x256xi1> to vector<32x256xi1>
    %193 = vector.broadcast %cst_79 : f32 to vector<32x256xf32>
    %194 = arith.select %192, %190, %193 : vector<32x256xi1>, vector<32x256xf32>
    %c6_80 = arith.constant 6 : index
    %c0_81 = arith.constant 0 : index
    %c0_82 = arith.constant 0 : index
    %195 = vector.load %arg3[%c6_80, %c0_81, %c0_82] : memref<9x32x32xf32, #tpu.memory_space<vmem>>, vector<1x32x32xf32>
    %196 = vector.shape_cast %195 : vector<1x32x32xf32> to vector<32x32xf32>
    %cst_83 = arith.constant dense<0.000000e+00> : vector<32x256xf32>
    %197 = tpu.matmul %196, %194, %cst_83 {dimension_numbers = #tpu.dot_dimension_numbers<[1], [0], [0], [1], [0, 0, 1, 1], [], []>} : vector<32x32xf32>, vector<32x256xf32>, vector<32x256xf32> -> vector<32x256xf32>
    %198 = arith.addf %187, %197 : vector<32x256xf32>
    %199 = vector.extract_strided_slice %129 {offsets = [0, 16], sizes = [32, 240], strides = [1, 1]} : vector<32x256xf32> to vector<32x240xf32>
    %200 = vector.extract_strided_slice %129 {offsets = [0, 0], sizes = [32, 16], strides = [1, 1]} : vector<32x256xf32> to vector<32x16xf32>
    %201 = tpu.concatenate %199, %200 in 1 : vector<32x240xf32>, vector<32x16xf32> -> vector<32x256xf32>
    %cst_84 = arith.constant 0.000000e+00 : f32
    %202 = vector.shape_cast %29 : vector<1x256xi1> to vector<1x256xi1>
    %203 = vector.broadcast %202 : vector<1x256xi1> to vector<32x256xi1>
    %204 = vector.broadcast %cst_84 : f32 to vector<32x256xf32>
    %205 = arith.select %203, %201, %204 : vector<32x256xi1>, vector<32x256xf32>
    %c7_85 = arith.constant 7 : index
    %c0_86 = arith.constant 0 : index
    %c0_87 = arith.constant 0 : index
    %206 = vector.load %arg3[%c7_85, %c0_86, %c0_87] : memref<9x32x32xf32, #tpu.memory_space<vmem>>, vector<1x32x32xf32>
    %207 = vector.shape_cast %206 : vector<1x32x32xf32> to vector<32x32xf32>
    %cst_88 = arith.constant dense<0.000000e+00> : vector<32x256xf32>
    %208 = tpu.matmul %207, %205, %cst_88 {dimension_numbers = #tpu.dot_dimension_numbers<[1], [0], [0], [1], [0, 0, 1, 1], [], []>} : vector<32x32xf32>, vector<32x256xf32>, vector<32x256xf32> -> vector<32x256xf32>
    %209 = arith.addf %198, %208 : vector<32x256xf32>
    %210 = vector.extract_strided_slice %129 {offsets = [0, 17], sizes = [32, 239], strides = [1, 1]} : vector<32x256xf32> to vector<32x239xf32>
    %211 = vector.extract_strided_slice %129 {offsets = [0, 0], sizes = [32, 17], strides = [1, 1]} : vector<32x256xf32> to vector<32x17xf32>
    %212 = tpu.concatenate %210, %211 in 1 : vector<32x239xf32>, vector<32x17xf32> -> vector<32x256xf32>
    %cst_89 = arith.constant 0.000000e+00 : f32
    %213 = vector.shape_cast %34 : vector<1x256xi1> to vector<1x256xi1>
    %214 = vector.broadcast %213 : vector<1x256xi1> to vector<32x256xi1>
    %215 = vector.broadcast %cst_89 : f32 to vector<32x256xf32>
    %216 = arith.select %214, %212, %215 : vector<32x256xi1>, vector<32x256xf32>
    %c8_90 = arith.constant 8 : index
    %c0_91 = arith.constant 0 : index
    %c0_92 = arith.constant 0 : index
    %217 = vector.load %arg3[%c8_90, %c0_91, %c0_92] : memref<9x32x32xf32, #tpu.memory_space<vmem>>, vector<1x32x32xf32>
    %218 = vector.shape_cast %217 : vector<1x32x32xf32> to vector<32x32xf32>
    %cst_93 = arith.constant dense<0.000000e+00> : vector<32x256xf32>
    %219 = tpu.matmul %218, %216, %cst_93 {dimension_numbers = #tpu.dot_dimension_numbers<[1], [0], [0], [1], [0, 0, 1, 1], [], []>} : vector<32x32xf32>, vector<32x256xf32>, vector<32x256xf32> -> vector<32x256xf32>
    %220 = arith.addf %209, %219 : vector<32x256xf32>
    %c0_94 = arith.constant 0 : index
    %c0_95 = arith.constant 0 : index
    %221 = vector.load %arg4[%c0_94, %c0_95] : memref<32x2xf32, #tpu.memory_space<vmem>>, vector<32x2xf32>
    %c0_96 = arith.constant 0 : index
    %c0_97 = arith.constant 0 : index
    %222 = vector.load %arg5[%c0_96, %c0_97] : memref<32x2xf32, #tpu.memory_space<vmem>>, vector<32x2xf32>
    %cst_98 = arith.constant dense<0.000000e+00> : vector<32xf32>
    %223 = vector.multi_reduction <add>, %220, %cst_98 [1] : vector<32x256xf32> to vector<32xf32>
    %224 = vector.shape_cast %223 : vector<32xf32> to vector<32x1xf32>
    %cst_99 = arith.constant 3.906250e-03 : f32
    %225 = vector.broadcast %cst_99 : f32 to vector<32x1xf32>
    %226 = arith.mulf %224, %225 : vector<32x1xf32>
    %227 = vector.broadcast %226 : vector<32x1xf32> to vector<32x2xf32>
    %228 = arith.mulf %221, %227 : vector<32x2xf32>
    %cst_100 = arith.constant dense<0.000000e+00> : vector<2xf32>
    %229 = vector.multi_reduction <add>, %228, %cst_100 [0] : vector<32x2xf32> to vector<2xf32>
    %230 = vector.shape_cast %229 : vector<2xf32> to vector<1x2xf32>
    %cst_101 = arith.constant 0.000000e+00 : f32
    %231 = vector.broadcast %cst_101 : f32 to vector<1x2xf32>
    %232 = arith.maximumf %230, %231 : vector<1x2xf32>
    %233 = vector.broadcast %232 : vector<1x2xf32> to vector<32x2xf32>
    %234 = arith.mulf %222, %233 : vector<32x2xf32>
    %cst_102 = arith.constant dense<0.000000e+00> : vector<32xf32>
    %235 = vector.multi_reduction <add>, %234, %cst_102 [1] : vector<32x2xf32> to vector<32xf32>
    %236 = vector.shape_cast %235 : vector<32xf32> to vector<32x1xf32>
    %cst_103 = arith.constant 0.000000e+00 : f32
    %237 = vector.broadcast %cst_103 : f32 to vector<32x1xf32>
    %238 = arith.subf %237, %236 : vector<32x1xf32>
    %239 = math.exp %238 : vector<32x1xf32>
    %cst_104 = arith.constant 1.000000e+00 : f32
    %240 = vector.broadcast %cst_104 : f32 to vector<32x1xf32>
    %241 = arith.addf %240, %239 : vector<32x1xf32>
    %cst_105 = arith.constant 1.000000e+00 : f32
    %242 = vector.broadcast %cst_105 : f32 to vector<32x1xf32>
    %243 = arith.divf %242, %241 : vector<32x1xf32>
    %244 = vector.broadcast %243 : vector<32x1xf32> to vector<32x256xf32>
    %245 = arith.mulf %220, %244 : vector<32x256xf32>
    %c0_106 = arith.constant 0 : index
    %c0_107 = arith.constant 0 : index
    %c0_108 = arith.constant 0 : index
    %246 = vector.load %arg1[%c0_106, %c0_107, %c0_108] : memref<1x32x256xf32, #tpu.memory_space<vmem>>, vector<1x32x256xf32>
    %247 = vector.shape_cast %246 : vector<1x32x256xf32> to vector<32x256xf32>
    %248 = arith.addf %245, %247 : vector<32x256xf32>
    %c0_109 = arith.constant 0 : index
    %c0_110 = arith.constant 0 : index
    %c0_111 = arith.constant 0 : index
    %249 = vector.load %arg6[%c0_109, %c0_110, %c0_111] : memref<1x32x256xf32, #tpu.memory_space<vmem>>, vector<1x32x256xf32>
    %250 = vector.shape_cast %249 : vector<1x32x256xf32> to vector<32x256xf32>
    %251 = vector.shape_cast %248 : vector<32x256xf32> to vector<1x32x256xf32>
    tpu.vector_store %arg6[%c0_109, %c0_110, %c0_111], %251 {strides = array<i32>} : memref<1x32x256xf32, #tpu.memory_space<vmem>>, vector<1x32x256xf32>,
    return
  }
  func.func @transform_0(%arg0: i32) -> (i32, i32, i32) {
    %c0_i32 = arith.constant 0 : i32
    %c0_i32_0 = arith.constant 0 : i32
    %c0_i32_1 = arith.constant 0 : i32
    return %arg0, %c0_i32, %c0_i32_0 : i32, i32, i32
  }
  func.func @transform_1(%arg0: i32) -> (i32, i32, i32) {
    %c0_i32 = arith.constant 0 : i32
    %c0_i32_0 = arith.constant 0 : i32
    %c0_i32_1 = arith.constant 0 : i32
    %c0_i32_2 = arith.constant 0 : i32
    return %c0_i32, %c0_i32_0, %c0_i32_1 : i32, i32, i32
  }
  func.func @transform_2(%arg0: i32) -> (i32, i32, i32) {
    %c0_i32 = arith.constant 0 : i32
    %c0_i32_0 = arith.constant 0 : i32
    %c0_i32_1 = arith.constant 0 : i32
    %c0_i32_2 = arith.constant 0 : i32
    return %c0_i32, %c0_i32_0, %c0_i32_1 : i32, i32, i32
  }
  func.func @transform_3(%arg0: i32) -> (i32, i32) {
    %c0_i32 = arith.constant 0 : i32
    %c0_i32_0 = arith.constant 0 : i32
    %c0_i32_1 = arith.constant 0 : i32
    return %c0_i32, %c0_i32_0 : i32, i32
  }
  func.func @transform_4(%arg0: i32) -> (i32, i32) {
    %c0_i32 = arith.constant 0 : i32
    %c0_i32_0 = arith.constant 0 : i32
    %c0_i32_1 = arith.constant 0 : i32
    return %c0_i32, %c0_i32_0 : i32, i32
  }
  func.func @transform_5(%arg0: i32) -> (i32, i32, i32) {
    %c0_i32 = arith.constant 0 : i32
    %c0_i32_0 = arith.constant 0 : i32
    %c0_i32_1 = arith.constant 0 : i32
    return %arg0, %c0_i32, %c0_i32_0 : i32, i32, i32
  }
}

</mosaic_0001>

<bundles_post_ra>
// kernel: residual_block_enhance_forward.1
= control target key start
LH: loop header
LB: loop body
LE: loop exit
PB: predicated region body
PF: predicated region fallthrough
CT: control target
= control target key end

     0   :  { %s3572_s18 = smov 0   ;;  %s5027_s0 = inlined_call_operand.vmem [shape: f32[2,32,256], index: 0, kind: input, shape index: {}]   ;;  %s5028_s1 = inlined_call_operand.vmem [shape: f32[9,32,32], index: 1, kind: input, shape index: {}]   ;;  %s5029_s2 = inlined_call_operand.vmem [shape: f32[9,32,32], index: 2, kind: input, shape index: {}]   ;;  %s5030_s3 = inlined_call_operand.vmem [shape: f32[32,2], index: 3, kind: input, shape index: {}]   ;;  %s5031_s4 = inlined_call_operand.vmem [shape: f32[32,2], index: 4, kind: input, shape index: {}]   ;;  %s5032_s5 = inlined_call_operand.vmem [shape: f32[2,32,256], index: 5, kind: output, shape index: {}]  }
   0x1 LB: > { %s3207_s19 = sadd.s32 4294967295, %s3531_s18   ;;  %p3211_p0 = scmp.ge.s32.totalorder %s3531_s18, 1  ;;  %s3531_s18 = sphi %s3572_s18, %s15_s18  }
   0x2   : > { %p187_p1 = scmp.lt.s32.totalorder %s3531_s18, 3 }
   0x4   : > { %p188_p2 = pnand %p3211_p0, %p187_p1 }
   0x6   : > { %191 = sbr.rel (%p188_p2) target bundleno = 1265 (0x4f1), region = 40 }
   0xb   : > { %p215_p3 = scmp.lt.s32.totalorder %s3207_s19, 1  ;;  %s3533_s24 = smov 16   ;;  %v5051_v8 = vmov 0.0   ;;  %v225_v9 = vlaneseq  ;;  %vm5035_vm0 = vcmask 130048   ;;  %v5078_v30 = vmov 0  ;;  %v3216_v36 = vld [vmem:[%s5028_s1 + $0x20] sm:$0xff] }
   0xc   : > { %450 = vmatprep.mubr.f32.mxu0 %v5051_v8  ;;  %551 = vmatprep.mubr.f32.mxu1 %v5051_v8  ;;  %s3535_s25 = smov 17   ;;  %s3536_s26 = smov 15   ;;  %v5081_v33 = vmov 0  ;;  %vm5075_vm5 = vcmask 261120   ;;  %vm5040_vm6 = vcmask 138240   ;;  %v5086_v40 = vmov 0 }
   0xd   : > { %s5253_s19 = smov (!%p215_p3, %s3207_s19), 1  ;;  %s3537_s27 = smov 1   ;;  %v3720_v10 = vand.u32 127, %v225_v9  ;;  %v3217_v43 = vld [vmem:[%s5028_s1 + $0x28] sm:$0xff]  ;;  %v5089_v44 = vmov 0  ;;  %v5092_v47 = vmov 0 }
   0xe   : > { %s3482_s20 = sshll.u32 %s5253_s19, 6  ;;  %s3538_s28 = smov 127   ;;  %v3218_v50 = vld [vmem:[%s5028_s1 + $0x30] sm:$0xff]  ;;  %vm5037_vm11 = vcmask 121856   ;;  %v5095_v51 = vmov 0  ;;  %v5098_v54 = vmov 0 }
   0xf   : > { %s3588_s23 = scalar_lea.vmem %s5027_s0, %s3482_s20  ;;  %s3539_s29 = smov 113   ;;  %v227_v11 = vadd.s32 128, %v3720_v10  ;;  %v230_v13 = vshra.s32 %v3720_v10, 4  ;;  %v228_v27 = vand.u32 15, %v3720_v10  ;;  %v3219_v57 = vld [vmem:[%s5028_s1 + $0x38] sm:$0xff]  ;;  %vm5036_vm14 = vcmask 7168  }
  0x10   : > { %v3591_v0 = vld [vmem:[%s3588_s23 + $0x38] sm:$0xff]  ;;  %v3594_v1 = vld [vmem:[%s3588_s23 + $0x28] sm:$0xff]  ;;  %v3601_v2 = vld [vmem:[%s3588_s23 + $0x30] sm:$0xff]  ;;  %s3540_s30 = smov 112   ;;  %s3541_s6 = smov 111   ;;  %vm5038_vm15 = vcmask 1039360  }
  0x11   : > { %325 = vrot.lane.b32.xlu0 %v3591_v0, %s3533_s24  ;;  %323 = vrot.lane.b32.xlu1 %v3594_v1, %s3533_s24  ;;  %v3604_v3 = vld [vmem:[%s3588_s23 + $0x20] sm:$0xff]  ;;  %v3611_v4 = vld [vmem:[%s3588_s23 + $0x18] sm:$0xff]  ;;  %v231_v12 = vshra.s32 %v227_v11, 4  ;;  %v3738_v17 = vand.u32 15, %v230_v13  ;;  %v229_v23 = vand.u32 15, %v227_v11  ;;  %vm3777_vm4 = vcmp.ge.s32.totalorder %v228_v27, 1 }
  0x12   : > { %v3614_v5 = vld [vmem:[%s3588_s23 + $0x10] sm:$0xff]  ;;  %v3621_v6 = vld [vmem:[%s3588_s23 + $0x8] sm:$0xff]  ;;  %v3624_v7 = vld [vmem:[%s3588_s23] sm:$0xff]  ;;  %v5082_v33 = vsel %vm3777_vm4, 4294967295, %v5081_v33  ;;  %vm3822_vm10 = vcmp.lt.s32.totalorder %v228_v27, 15 }
  0x13   : > { %v3736_v14 = vand.u32 15, %v231_v12  ;;  %vm5033_vm2 = vcmp.ge.s32.totalorder %v3738_v17, 1  ;;  %vm3773_vm3 = vcmp.ge.s32.totalorder %v229_v23, 1  ;;  %5083 = vst [vmem:[#allocation3_spill] sm:$0xff] %v5082_v33  ;;  %vm3817_vm9 = vcmp.lt.s32.totalorder %v229_v23, 15  ;;  %v3244_v27 = vld [vmem:[%s5028_s1 + $0x40] sm:$0xff] }
  0x14   : > { %v5079_v30 = vsel %vm3773_vm3, 4294967295, %v5078_v30  ;;  %vm3802_vm8 = vmand %vm5033_vm2, %vm3777_vm4  ;;  %v5090_v44 = vsel %vm3817_vm9, 4294967295, %v5089_v44  ;;  %v5093_v47 = vsel %vm3822_vm10, 4294967295, %v5092_v47 }
  0x15   : > { %337 = vrot.lane.b32.xlu0 %v3601_v2, %s3533_s24  ;;  %335 = vrot.lane.b32.xlu1 %v3604_v3, %s3533_s24  ;;  %vm5034_vm1 = vcmp.ge.s32.totalorder %v3736_v14, 1  ;;  %5080 = vst [vmem:[#allocation2_spill] sm:$0xff] %v5079_v30  ;;  %v5087_v40 = vsel %vm3802_vm8, 4294967295, %v5086_v40  ;;  %5091 = vst [vmem:[#allocation5_spill] sm:$0xff] %v5090_v44 }
  0x16   : > { %vm3794_vm7 = vmand %vm5034_vm1, %vm3773_vm3  ;;  %5088 = vst [vmem:[#allocation4_spill] sm:$0xff] %v5087_v40 }
  0x17   : > { %5094 = vst [vmem:[#allocation6_spill] sm:$0xff] %v5093_v47  ;;  %vm3840_vm12 = vmand %vm5034_vm1, %vm3817_vm9 }
  0x18   : > { %v5096_v51 = vsel %vm3840_vm12, 4294967295, %v5095_v51  ;;  %vm3848_vm13 = vmand %vm5033_vm2, %vm3822_vm10 }
  0x19   : > { %321 = vrot.lane.b32.xlu0 %v3611_v4, %s3533_s24  ;;  %333 = vrot.lane.b32.xlu1 %v3614_v5, %s3533_s24  ;;  %5097 = vst [vmem:[#allocation7_spill] sm:$0xff] %v5096_v51  ;;  %v5099_v54 = vsel %vm3848_vm13, 4294967295, %v5098_v54 }
  0x1a   : > { %5100 = vst [vmem:[#allocation8_spill] sm:$0xff] %v5099_v54 }
  0x1d   : > { %319 = vrot.lane.b32.xlu0 %v3621_v6, %s3533_s24  ;;  %331 = vrot.lane.b32.xlu1 %v3624_v7, %s3533_s24 }
  0x21   : > { %268 = vrot.lane.b32.xlu0 %v3591_v0, %s3535_s25  ;;  %284 = vrot.lane.b32.xlu1 %v3601_v2, %s3535_s25 }
  0x25   : > { %266 = vrot.lane.b32.xlu0 %v3594_v1, %s3535_s25  ;;  %282 = vrot.lane.b32.xlu1 %v3604_v3, %s3535_s25 }
  0x29   : > { %582 = vrot.lane.b32.xlu0 %v3591_v0, %s3536_s26  ;;  %594 = vrot.lane.b32.xlu1 %v3601_v2, %s3536_s26 }
  0x2d   : > { %264 = vrot.lane.b32.xlu0 %v3611_v4, %s3535_s25  ;;  %280 = vrot.lane.b32.xlu1 %v3614_v5, %s3535_s25 }
  0x31   : > { %580 = vrot.lane.b32.xlu0 %v3594_v1, %s3536_s26  ;;  %592 = vrot.lane.b32.xlu1 %v3604_v3, %s3536_s26 }
  0x35   : > { %262 = vrot.lane.b32.xlu0 %v3621_v6, %s3535_s25  ;;  %278 = vrot.lane.b32.xlu1 %v3624_v7, %s3535_s25 }
  0x39   : > { %578 = vrot.lane.b32.xlu0 %v3611_v4, %s3536_s26  ;;  %590 = vrot.lane.b32.xlu1 %v3614_v5, %s3536_s26 }
  0x3d   : > { %576 = vrot.lane.b32.xlu0 %v3621_v6, %s3536_s26  ;;  %588 = vrot.lane.b32.xlu1 %v3624_v7, %s3536_s26 }
  0x41   : > { %745 = vrot.lane.b32.xlu0 %v3591_v0, %s3537_s27  ;;  %757 = vrot.lane.b32.xlu1 %v3601_v2, %s3537_s27 }
  0x45   : > { %743 = vrot.lane.b32.xlu0 %v3594_v1, %s3537_s27  ;;  %755 = vrot.lane.b32.xlu1 %v3604_v3, %s3537_s27 }
  0x49   : > { %741 = vrot.lane.b32.xlu0 %v3611_v4, %s3537_s27  ;;  %753 = vrot.lane.b32.xlu1 %v3614_v5, %s3537_s27 }
  0x4d   : > { %739 = vrot.lane.b32.xlu0 %v3621_v6, %s3537_s27  ;;  %751 = vrot.lane.b32.xlu1 %v3624_v7, %s3537_s27 }
  0x51   : > { %1028 = vrot.lane.b32.xlu0 %v3601_v2, %s3538_s28  ;;  %1030 = vrot.lane.b32.xlu1 %v3591_v0, %s3538_s28 }
  0x55   : > { %1024 = vrot.lane.b32.xlu0 %v3604_v3, %s3538_s28  ;;  %1026 = vrot.lane.b32.xlu1 %v3594_v1, %s3538_s28 }
  0x59   : > { %1191 = vrot.lane.b32.xlu0 %v3601_v2, %s3539_s29  ;;  %1193 = vrot.lane.b32.xlu1 %v3591_v0, %s3539_s29 }
  0x5d   : > { %1020 = vrot.lane.b32.xlu0 %v3614_v5, %s3538_s28  ;;  %1022 = vrot.lane.b32.xlu1 %v3611_v4, %s3538_s28 }
  0x61   : > { %1187 = vrot.lane.b32.xlu0 %v3604_v3, %s3539_s29  ;;  %1189 = vrot.lane.b32.xlu1 %v3594_v1, %s3539_s29 }
  0x65   : > { %1016 = vrot.lane.b32.xlu0 %v3624_v7, %s3538_s28  ;;  %1018 = vrot.lane.b32.xlu1 %v3621_v6, %s3538_s28 }
  0x69   : > { %1183 = vrot.lane.b32.xlu0 %v3614_v5, %s3539_s29  ;;  %1185 = vrot.lane.b32.xlu1 %v3611_v4, %s3539_s29 }
  0x6d   : > { %1179 = vrot.lane.b32.xlu0 %v3624_v7, %s3539_s29  ;;  %1181 = vrot.lane.b32.xlu1 %v3621_v6, %s3539_s29 }
  0x71   : > { %1354 = vrot.lane.b32.xlu0 %v3601_v2, %s3540_s30  ;;  %1356 = vrot.lane.b32.xlu1 %v3591_v0, %s3540_s30 }
  0x75   : > { %1350 = vrot.lane.b32.xlu0 %v3604_v3, %s3540_s30  ;;  %1352 = vrot.lane.b32.xlu1 %v3594_v1, %s3540_s30 }
  0x79   : > { %1517 = vrot.lane.b32.xlu0 %v3601_v2, %s3541_s6  ;;  %1519 = vrot.lane.b32.xlu1 %v3591_v0, %s3541_s6 }
  0x7d   : > { %1346 = vrot.lane.b32.xlu0 %v3614_v5, %s3540_s30  ;;  %1348 = vrot.lane.b32.xlu1 %v3611_v4, %s3540_s30 }
  0x81   : > { %1513 = vrot.lane.b32.xlu0 %v3604_v3, %s3541_s6  ;;  %1515 = vrot.lane.b32.xlu1 %v3594_v1, %s3541_s6 }
  0x83   : > { %v326_v15 = vpop.permute.xlu0 %325  ;;  %v324_v16 = vpop.permute.xlu1 %323 }
  0x85   : > { %1342 = vrot.lane.b32.xlu0 %v3624_v7, %s3540_s30  ;;  %1344 = vrot.lane.b32.xlu1 %v3621_v6, %s3540_s30 }
  0x87   : > { %v338_v18 = vpop.permute.xlu0 %337  ;;  %v336_v19 = vpop.permute.xlu1 %335 }
  0x88   : > { %v343_v20 = vsel %vm5035_vm0, %v338_v18, %v326_v15  ;;  %v355_v21 = vsel %vm5035_vm0, %v326_v15, %v338_v18  ;;  %v342_v22 = vsel %vm5035_vm0, %v336_v19, %v324_v16  ;;  %v354_v26 = vsel %vm5035_vm0, %v324_v16, %v336_v19  ;;  %v315_v16 = vld [vmem:[%s5028_s1] sm:$0xff] }
  0x89   : > { %3220 = vmatprep.subr.msk.mxu0 %vm5034_vm1, %v343_v20  ;;  %1509 = vrot.lane.b32.xlu0 %v3614_v5, %s3541_s6 }
  0x8a   : > { %1511 = vrot.lane.b32.xlu1 %v3611_v4, %s3541_s6  ;;  %3221 = vmatpush1.msk.msra.mxu0 %vm5033_vm2, %v355_v21 }
  0x8b   : > { %3222 = vmatprep.subr.msk.mxu0 %vm5034_vm1, %v342_v22  ;;  %v322_v24 = vpop.permute.xlu0 %321  ;;  %v334_v25 = vpop.permute.xlu1 %333  ;;  %v316_v22 = vld [vmem:[%s5028_s1 + $0x8] sm:$0xff] }
  0x8c   : > { %3223 = vmatpush1.msk.msra.mxu0 %vm5033_vm2, %v354_v26  ;;  %v341_v28 = vsel %vm5035_vm0, %v334_v25, %v322_v24  ;;  %v353_v29 = vsel %vm5035_vm0, %v322_v24, %v334_v25 }
  0x8d   : > { %3224 = vmatprep.subr.msk.mxu0 %vm5034_vm1, %v341_v28  ;;  %1505 = vrot.lane.b32.xlu0 %v3624_v7, %s3541_s6  ;;  %v317_v28 = vld [vmem:[%s5028_s1 + $0x10] sm:$0xff] }
  0x8e   : > { %1507 = vrot.lane.b32.xlu1 %v3621_v6, %s3541_s6  ;;  %3225 = vmatpush1.msk.msra.mxu0 %vm5033_vm2, %v353_v29 }
  0x8f   : > { %v320_v31 = vpop.permute.xlu0 %319  ;;  %v332_v32 = vpop.permute.xlu1 %331 }
  0x90   : > { %v340_v34 = vsel %vm5035_vm0, %v332_v32, %v320_v31  ;;  %v352_v35 = vsel %vm5035_vm0, %v320_v31, %v332_v32  ;;  %vm5039_vm0 = vcmask 924672  }
  0x91   : > { %3226 = vmatprep.subr.msk.mxu0 %vm5034_vm1, %v340_v34  ;;  %vm5042_vm1 = vcmp.lt.s32.totalorder %v3738_v17, 15 }
  0x92   : > { %3227 = vmatpush1.msk.msra.mxu0 %vm5033_vm2, %v352_v35  ;;  %v3245_v35 = vld [vmem:[%s5028_s1 + $0x48] sm:$0xff]  ;;  %vm5043_vm2 = vcmp.lt.s32.totalorder %v3736_v14, 15 }
  0x93   : > { %v269_v38 = vpop.permute.xlu0 %268  ;;  %v285_v39 = vpop.permute.xlu1 %284  ;;  %3228 = vmatmul.mubr.msk.f32.vlgmr.msra.gmra.mxu0 %vm5075_vm5, %v3216_v36  ;;  %v318_v36 = vld [vmem:[%s5028_s1 + $0x18] sm:$0xff] }
  0x94   : > { %v290_v41 = vsel %vm5040_vm6, %v285_v39, %v269_v38  ;;  %v302_v42 = vsel %vm5040_vm6, %v269_v38, %v285_v39  ;;  %456 = vmatprep.mubr.f32.mxu0 %v5051_v8 }
  0x95   : > { %3232 = vmatprep.subr.msk.mxu1 %vm3794_vm7, %v290_v41 }
  0x96   : > { %3233 = vmatpush1.msk.msra.mxu1 %vm3802_vm8, %v302_v42  ;;  %v3246_v42 = vld [vmem:[%s5028_s1 + $0x50] sm:$0xff] }
  0x97   : > { %v267_v45 = vpop.permute.xlu0 %266  ;;  %v283_v46 = vpop.permute.xlu1 %282  ;;  %3229 = vmatmul.mubr.msk.f32.gmra.mxu0 %vm5075_vm5, %v3217_v43 }
  0x98   : > { %v289_v48 = vsel %vm5040_vm6, %v283_v46, %v267_v45  ;;  %v301_v49 = vsel %vm5040_vm6, %v267_v45, %v283_v46  ;;  %462 = vmatprep.mubr.f32.mxu0 %v5051_v8 }
  0x99   : > { %3234 = vmatprep.subr.msk.mxu1 %vm3794_vm7, %v289_v48 }
  0x9a   : > { %3235 = vmatpush1.msk.msra.mxu1 %vm3802_vm8, %v301_v49 }
  0x9b   : > { %v583_v52 = vpop.permute.xlu0 %582  ;;  %v595_v53 = vpop.permute.xlu1 %594  ;;  %3230 = vmatmul.mubr.msk.f32.gmra.mxu0 %vm5075_vm5, %v3218_v50 }
  0x9c   : > { %v612_v55 = vsel %vm5037_vm11, %v583_v52, %v595_v53  ;;  %v600_v56 = vsel %vm5037_vm11, %v595_v53, %v583_v52  ;;  %468 = vmatprep.mubr.f32.mxu0 %v5051_v8 }
  0x9d   : > { %3248 = vmatprep.subr.msk.mxu0 %vm3840_vm12, %v600_v56  ;;  %v3277_v56 = vld [vmem:[%s5028_s1 + $0x88] sm:$0xff] }
  0x9e   : > { %3249 = vmatpush1.msk.msra.mxu0 %vm3848_vm13, %v612_v55  ;;  %v3261_v55 = vld [vmem:[%s5028_s1 + $0x68] sm:$0xff] }
  0x9f   : > { %v265_v58 = vpop.permute.xlu0 %264  ;;  %v281_v59 = vpop.permute.xlu1 %280  ;;  %3231 = vmatmul.mubr.msk.f32.gmra.mxu0 %vm5075_vm5, %v3219_v57 }
  0xa0   : > { %v288_v60 = vsel %vm5040_vm6, %v281_v59, %v265_v58  ;;  %v300_v61 = vsel %vm5040_vm6, %v265_v58, %v281_v59  ;;  %706 = vmatprep.mubr.f32.mxu0 %v5051_v8 }
  0xa1   : > { %3236 = vmatprep.subr.msk.mxu1 %vm3794_vm7, %v288_v60 }
  0xa2   : > { %3237 = vmatpush1.msk.msra.mxu1 %vm3802_vm8, %v300_v61  ;;  %v3262_v61 = vld [vmem:[%s5028_s1 + $0x70] sm:$0xff] }
  0xa3   : > { %v581_v62 = vpop.permute.xlu0 %580  ;;  %v593_v63 = vpop.permute.xlu1 %592 }
  0xa4   : > { %v611_v9 = vsel %vm5037_vm11, %v581_v62, %v593_v63  ;;  %v599_v10 = vsel %vm5037_vm11, %v593_v63, %v581_v62  ;;  %v3278_v62 = vld [vmem:[%s5028_s1 + $0x90] sm:$0xff]  ;;  %v5101_v63 = vmov 0 }
  0xa5   : > { %3250 = vmatprep.subr.msk.mxu0 %vm3840_vm12, %v599_v10 }
  0xa6   : > { %3251 = vmatpush1.msk.msra.mxu0 %vm3848_vm13, %v611_v9 }
  0xa7   : > { %v263_v11 = vpop.permute.xlu0 %262  ;;  %v279_v12 = vpop.permute.xlu1 %278 }
  0xa8   : > { %v287_v13 = vsel %vm5040_vm6, %v279_v12, %v263_v11  ;;  %v299_v15 = vsel %vm5040_vm6, %v263_v11, %v279_v12  ;;  %v5104_v11 = vmov 0  ;;  %vm4122_vm6 = vmand %vm5043_vm2, %vm3817_vm9 }
  0xa9   : > { %3238 = vmatprep.subr.msk.mxu1 %vm3794_vm7, %v287_v13 }
  0xaa   : > { %3239 = vmatpush1.msk.msra.mxu1 %vm3802_vm8, %v299_v15  ;;  %v3263_v15 = vld [vmem:[%s5028_s1 + $0x78] sm:$0xff] }
  0xab   : > { %v579_v18 = vpop.permute.xlu0 %578  ;;  %v591_v19 = vpop.permute.xlu1 %590  ;;  %3240 = vmatmul.mubr.msk.f32.vlgmr.msra.gmra.mxu1 %vm5075_vm5, %v315_v16  ;;  %v3279_v16 = vld [vmem:[%s5028_s1 + $0x98] sm:$0xff] }
  0xac   : > { %v610_v20 = vsel %vm5037_vm11, %v579_v18, %v591_v19  ;;  %v598_v21 = vsel %vm5037_vm11, %v591_v19, %v579_v18  ;;  %557 = vmatprep.mubr.f32.mxu1 %v5051_v8 }
  0xad   : > { %3252 = vmatprep.subr.msk.mxu0 %vm3840_vm12, %v598_v21 }
  0xae   : > { %3253 = vmatpush1.msk.msra.mxu0 %vm3848_vm13, %v610_v20 }
  0xaf   : > { %v577_v23 = vpop.permute.xlu0 %576  ;;  %v589_v24 = vpop.permute.xlu1 %588  ;;  %3241 = vmatmul.mubr.msk.f32.gmra.mxu1 %vm5075_vm5, %v316_v22 }
  0xb0   : > { %v609_v25 = vsel %vm5037_vm11, %v577_v23, %v589_v24  ;;  %v597_v26 = vsel %vm5037_vm11, %v589_v24, %v577_v23  ;;  %563 = vmatprep.mubr.f32.mxu1 %v5051_v8  ;;  %vm4020_vm11 = vmand %vm5042_vm1, %vm3777_vm4 }
  0xb1   : > { %3254 = vmatprep.subr.msk.mxu0 %vm3840_vm12, %v597_v26  ;;  %v5105_v11 = vsel %vm4020_vm11, 4294967295, %v5104_v11 }
  0xb2   : > { %3255 = vmatpush1.msk.msra.mxu0 %vm3848_vm13, %v609_v25  ;;  %5106 = vst [vmem:[#allocation10_spill] sm:$0xff] %v5105_v11 }
  0xb3   : > { %v746_v29 = vpop.permute.xlu0 %745  ;;  %v758_v31 = vpop.permute.xlu1 %757  ;;  %3256 = vmatmul.mubr.msk.f32.vlgmr.msra.gmra.mxu0 %vm5075_vm5, %v3244_v27  ;;  %3242 = vmatmul.mubr.msk.f32.gmra.mxu1 %vm5075_vm5, %v317_v28 }
  0xb4   : > { %v775_v32 = vsel %vm5036_vm14, %v746_v29, %v758_v31  ;;  %v763_v34 = vsel %vm5036_vm14, %v758_v31, %v746_v29  ;;  %712 = vmatprep.mubr.f32.mxu0 %v5051_v8  ;;  %943 = vmatprep.subr.mxu0 %v3591_v0  ;;  %v3284_v31 = vld [vmem:[%s5028_s1 + $0xa0] sm:$0xff] }
  0xb5   : > { %3264 = vmatprep.subr.msk.mxu1 %vm3773_vm3, %v763_v34  ;;  %569 = vmatprep.mubr.f32.mxu1 %v5051_v8 }
  0xb6   : > { %3265 = vmatpush1.msk.msra.mxu1 %vm3777_vm4, %v775_v32  ;;  %944 = vmatpush1.msra.mxu0 %v3601_v2 }
  0xb7   : > { %v744_v38 = vpop.permute.xlu0 %743  ;;  %v756_v39 = vpop.permute.xlu1 %755  ;;  %3257 = vmatmul.mubr.msk.f32.gmra.mxu0 %vm5075_vm5, %v3245_v35  ;;  %3243 = vmatmul.mubr.msk.f32.gmra.mxu1 %vm5075_vm5, %v318_v36 }
  0xb8   : > { %v774_v0 = vsel %vm5036_vm14, %v744_v38, %v756_v39  ;;  %v762_v41 = vsel %vm5036_vm14, %v756_v39, %v744_v38  ;;  %718 = vmatprep.mubr.f32.mxu0 %v5051_v8  ;;  %945 = vmatprep.subr.mxu0 %v3594_v1  ;;  %v3285_v38 = vld [vmem:[%s5028_s1 + $0xa8] sm:$0xff] }
  0xb9   : > { %3266 = vmatprep.subr.msk.mxu1 %vm3773_vm3, %v762_v41  ;;  %946 = vmatpush1.msra.mxu0 %v3604_v3  ;;  %v3247_v3 = vld [vmem:[%s5028_s1 + $0x58] sm:$0xff] }
  0xba   : > { %3267 = vmatpush1.msk.msra.mxu1 %vm3777_vm4, %v774_v0  ;;  %947 = vmatprep.subr.mxu0 %v3611_v4 }
  0xbb   : > { %v742_v2 = vpop.permute.xlu0 %741  ;;  %v754_v43 = vpop.permute.xlu1 %753  ;;  %3258 = vmatmul.mubr.msk.f32.gmra.mxu0 %vm5075_vm5, %v3246_v42  ;;  %869 = vmatprep.mubr.f32.mxu1 %v5051_v8 }
  0xbc   : > { %v773_v45 = vsel %vm5036_vm14, %v742_v2, %v754_v43  ;;  %v761_v1 = vsel %vm5036_vm14, %v754_v43, %v742_v2  ;;  %724 = vmatprep.mubr.f32.mxu0 %v5051_v8  ;;  %948 = vmatpush1.msra.mxu0 %v3614_v5  ;;  %v3260_v5 = vld [vmem:[%s5028_s1 + $0x60] sm:$0xff]  ;;  %v3286_v2 = vld [vmem:[%s5028_s1 + $0xb0] sm:$0xff] }
  0xbd   : > { %3268 = vmatprep.subr.msk.mxu1 %vm3773_vm3, %v761_v1  ;;  %949 = vmatprep.subr.mxu0 %v3621_v6  ;;  %v3276_v6 = vld [vmem:[%s5028_s1 + $0x80] sm:$0xff] }
  0xbe   : > { %3269 = vmatpush1.msk.msra.mxu1 %vm3777_vm4, %v773_v45  ;;  %950 = vmatpush1.msra.mxu0 %v3624_v7  ;;  %v3300_v43 = vld [vmem:[%s5028_s1 + $0xc0] sm:$0xff] }
  0xbf   : > { %v740_v4 = vpop.permute.xlu0 %739  ;;  %v752_v46 = vpop.permute.xlu1 %751  ;;  %3259 = vmatmul.mubr.msk.f32.gmra.mxu0 %vm5075_vm5, %v3247_v3 }
  0xc0   : > { %v772_v48 = vsel %vm5036_vm14, %v740_v4, %v752_v46  ;;  %v760_v49 = vsel %vm5036_vm14, %v752_v46, %v740_v4  ;;  %983 = vmatprep.mubr.f32.mxu0 %v5051_v8  ;;  %vm4011_vm14 = vmand %vm5043_vm2, %vm3773_vm3  ;;  %v3287_v46 = vld [vmem:[%s5028_s1 + $0xb8] sm:$0xff] }
  0xc1   : > { %3270 = vmatprep.subr.msk.mxu1 %vm3773_vm3, %v760_v49  ;;  %v5102_v63 = vsel %vm4011_vm14, 4294967295, %v5101_v63 }
  0xc2   : > { %3271 = vmatpush1.msk.msra.mxu1 %vm3777_vm4, %v772_v48  ;;  %5103 = vst [vmem:[#allocation9_spill] sm:$0xff] %v5102_v63  ;;  %v3301_v48 = vld [vmem:[%s5028_s1 + $0xc8] sm:$0xff] }
  0xc3   : > { %v1029_v7 = vpop.permute.xlu0 %1028  ;;  %v1031_v50 = vpop.permute.xlu1 %1030  ;;  %3272 = vmatmul.mubr.msk.f32.vlgmr.msra.gmra.mxu1 %vm5075_vm5, %v3260_v5  ;;  %3280 = vmatmul.mubr.msk.f32.vlgmr.msra.gmra.mxu0 %vm5075_vm5, %v3276_v6 }
  0xc4   : > { %v1036_v52 = vsel %vm5038_vm15, %v1029_v7, %v1031_v50  ;;  %v1052_v53 = vsel %vm5038_vm15, %v1031_v50, %v1029_v7  ;;  %875 = vmatprep.mubr.f32.mxu1 %v5051_v8  ;;  %989 = vmatprep.mubr.f32.mxu0 %v5051_v8  ;;  %v3302_v50 = vld [vmem:[%s5028_s1 + $0xd0] sm:$0xff] }
  0xc5   : > { %3288 = vmatprep.subr.msk.mxu1 %vm3817_vm9, %v1052_v53 }
  0xc6   : > { %3289 = vmatpush1.msk.msra.mxu1 %vm3822_vm10, %v1036_v52  ;;  %v5107_v52 = vmov 0 }
  0xc7   : > { %v1025_v57 = vpop.permute.xlu0 %1024  ;;  %v1027_v58 = vpop.permute.xlu1 %1026  ;;  %3273 = vmatmul.mubr.msk.f32.gmra.mxu1 %vm5075_vm5, %v3261_v55  ;;  %3281 = vmatmul.mubr.msk.f32.gmra.mxu0 %vm5075_vm5, %v3277_v56  ;;  %v5108_v52 = vsel %vm4122_vm6, 4294967295, %v5107_v52  ;;  %v5110_v56 = vmov 0 }
  0xc8   : > { %v1035_v59 = vsel %vm5038_vm15, %v1025_v57, %v1027_v58  ;;  %v1051_v60 = vsel %vm5038_vm15, %v1027_v58, %v1025_v57  ;;  %881 = vmatprep.mubr.f32.mxu1 %v5051_v8  ;;  %995 = vmatprep.mubr.f32.mxu0 %v5051_v8  ;;  %5109 = vst [vmem:[#allocation11_spill] sm:$0xff] %v5108_v52 }
  0xc9   : > { %3290 = vmatprep.subr.msk.mxu1 %vm3817_vm9, %v1051_v60 }
  0xca   : > { %3291 = vmatpush1.msk.msra.mxu1 %vm3822_vm10, %v1035_v59  ;;  %v3303_v59 = vld [vmem:[%s5028_s1 + $0xd8] sm:$0xff] }
  0xcb   : > { %v1192_v9 = vpop.permute.xlu0 %1191  ;;  %v1194_v10 = vpop.permute.xlu1 %1193  ;;  %3274 = vmatmul.mubr.msk.f32.gmra.mxu1 %vm5075_vm5, %v3262_v61  ;;  %3282 = vmatmul.mubr.msk.f32.gmra.mxu0 %vm5075_vm5, %v3278_v62 }
  0xcc   : > { %v1199_v12 = vsel %vm5039_vm0, %v1192_v9, %v1194_v10  ;;  %v1215_v13 = vsel %vm5039_vm0, %v1194_v10, %v1192_v9  ;;  %887 = vmatprep.mubr.f32.mxu1 %v5051_v8  ;;  %1001 = vmatprep.mubr.f32.mxu0 %v5051_v8 }
  0xcd   : > { %3304 = vmatprep.subr.msk.mxu0 %vm4011_vm14, %v1215_v13 }
  0xce   : > { %3305 = vmatpush1.msk.msra.mxu0 %vm4020_vm11, %v1199_v12 }
  0xcf   : > { %v1021_v18 = vpop.permute.xlu0 %1020  ;;  %v1023_v19 = vpop.permute.xlu1 %1022  ;;  %3275 = vmatmul.mubr.msk.f32.gmra.mxu1 %vm5075_vm5, %v3263_v15  ;;  %3283 = vmatmul.mubr.msk.f32.gmra.mxu0 %vm5075_vm5, %v3279_v16 }
  0xd0   : > { %v1034_v20 = vsel %vm5038_vm15, %v1021_v18, %v1023_v19  ;;  %v1050_v21 = vsel %vm5038_vm15, %v1023_v19, %v1021_v18  ;;  %1146 = vmatprep.mubr.f32.mxu1 %v5051_v8  ;;  %1309 = vmatprep.mubr.f32.mxu0 %v5051_v8 }
  0xd1   : > { %3292 = vmatprep.subr.msk.mxu1 %vm3817_vm9, %v1050_v21  ;;  %v3316_v21 = vld [vmem:[%s5028_s1 + $0xe0] sm:$0xff] }
  0xd2   : > { %3293 = vmatpush1.msk.msra.mxu1 %vm3822_vm10, %v1034_v20 }
  0xd3   : > { %v1188_v22 = vpop.permute.xlu0 %1187  ;;  %v1190_v23 = vpop.permute.xlu1 %1189 }
  0xd4   : > { %v1198_v24 = vsel %vm5039_vm0, %v1188_v22, %v1190_v23  ;;  %v1214_v25 = vsel %vm5039_vm0, %v1190_v23, %v1188_v22 }
  0xd5   : > { %3306 = vmatprep.subr.msk.mxu0 %vm4011_vm14, %v1214_v25 }
  0xd6   : > { %3307 = vmatpush1.msk.msra.mxu0 %vm4020_vm11, %v1198_v24  ;;  %v3317_v24 = vld [vmem:[%s5028_s1 + $0xe8] sm:$0xff] }
  0xd7   : > { %v1017_v26 = vpop.permute.xlu0 %1016  ;;  %v1019_v27 = vpop.permute.xlu1 %1018 }
  0xd8   : > { %v1033_v28 = vsel %vm5038_vm15, %v1017_v26, %v1019_v27  ;;  %v1049_v29 = vsel %vm5038_vm15, %v1019_v27, %v1017_v26  ;;  %vm5041_vm15 = vcmask 916480  }
  0xd9   : > { %3294 = vmatprep.subr.msk.mxu1 %vm3817_vm9, %v1049_v29  ;;  %v3318_v29 = vld [vmem:[%s5028_s1 + $0xf0] sm:$0xff] }
  0xda   : > { %3295 = vmatpush1.msk.msra.mxu1 %vm3822_vm10, %v1033_v28 }
  0xdb   : > { %v1184_v32 = vpop.permute.xlu0 %1183  ;;  %3296 = vmatmul.mubr.msk.f32.vlgmr.msra.gmra.mxu1 %vm5075_vm5, %v3284_v31  ;;  %v1186_v34 = vpop.permute.xlu1 %1185 }
  0xdc   : > { %v1197_v35 = vsel %vm5039_vm0, %v1184_v32, %v1186_v34  ;;  %v1213_v36 = vsel %vm5039_vm0, %v1186_v34, %v1184_v32  ;;  %1152 = vmatprep.mubr.f32.mxu1 %v5051_v8  ;;  %v3332_v34 = vld [vmem:[%s5028_s1 + $0x100] sm:$0xff] }
  0xdd   : > { %3308 = vmatprep.subr.msk.mxu0 %vm4011_vm14, %v1213_v36  ;;  %v3333_v36 = vld [vmem:[%s5028_s1 + $0x108] sm:$0xff] }
  0xde   : > { %3309 = vmatpush1.msk.msra.mxu0 %vm4020_vm11, %v1197_v35  ;;  %v3319_v35 = vld [vmem:[%s5028_s1 + $0xf8] sm:$0xff] }
  0xdf   : > { %v1180_v39 = vpop.permute.xlu0 %1179  ;;  %3297 = vmatmul.mubr.msk.f32.gmra.mxu1 %vm5075_vm5, %v3285_v38  ;;  %v1182_v0 = vpop.permute.xlu1 %1181  ;;  %v3334_v38 = vld [vmem:[%s5028_s1 + $0x110] sm:$0xff] }
  0xe0   : > { %v1196_v41 = vsel %vm5039_vm0, %v1180_v39, %v1182_v0  ;;  %v1212_v42 = vsel %vm5039_vm0, %v1182_v0, %v1180_v39  ;;  %1158 = vmatprep.mubr.f32.mxu1 %v5051_v8  ;;  %vm5044_vm0 = vcmask 908288   ;;  %v3335_v39 = vld [vmem:[%s5028_s1 + $0x118] sm:$0xff] }
  0xe1   : > { %3310 = vmatprep.subr.msk.mxu0 %vm4011_vm14, %v1212_v42  ;;  %vm5117_vm14 = vcmask 908288  }
  0xe2   : > { %3311 = vmatpush1.msk.msra.mxu0 %vm4020_vm11, %v1196_v41  ;;  %vm5116_vm11 = vcmp.lt.s32.totalorder %v3738_v17, 15 }
  0xe3   : > { %v1355_v45 = vpop.permute.xlu0 %1354  ;;  %3298 = vmatmul.mubr.msk.f32.gmra.mxu1 %vm5075_vm5, %v3286_v2  ;;  %3312 = vmatmul.mubr.msk.f32.vlgmr.msra.gmra.mxu0 %vm5075_vm5, %v3300_v43  ;;  %v1357_v1 = vpop.permute.xlu1 %1356 }
  0xe4   : > { %v1362_v3 = vsel %vm5041_vm15, %v1355_v45, %v1357_v1  ;;  %v1378_v4 = vsel %vm5041_vm15, %v1357_v1, %v1355_v45  ;;  %1164 = vmatprep.mubr.f32.mxu1 %v5051_v8  ;;  %1315 = vmatprep.mubr.f32.mxu0 %v5051_v8 }
  0xe5   : > { %3320 = vmatprep.subr.msk.mxu1 %vm5043_vm2, %v1378_v4 }
  0xe6   : > { %3321 = vmatpush1.msk.msra.mxu1 %vm5042_vm1, %v1362_v3 }
  0xe7   : > { %v1351_v49 = vpop.permute.xlu0 %1350  ;;  %3299 = vmatmul.mubr.msk.f32.gmra.mxu1 %vm5075_vm5, %v3287_v46  ;;  %3313 = vmatmul.mubr.msk.f32.gmra.mxu0 %vm5075_vm5, %v3301_v48  ;;  %v1353_v5 = vpop.permute.xlu1 %1352 }
  0xe8   : > { %v1361_v6 = vsel %vm5041_vm15, %v1351_v49, %v1353_v5  ;;  %v1377_v7 = vsel %vm5041_vm15, %v1353_v5, %v1351_v49  ;;  %1321 = vmatprep.mubr.f32.mxu0 %v5051_v8  ;;  %1472 = vmatprep.mubr.f32.mxu1 %v5051_v8  ;;  %vm4131_vm15 = vmand %vm5042_vm1, %vm3822_vm10 }
  0xe9   : > { %3322 = vmatprep.subr.msk.mxu1 %vm5043_vm2, %v1377_v7  ;;  %v5111_v56 = vsel %vm4131_vm15, 4294967295, %v5110_v56  ;;  %vm5118_vm10 = vmmov %vm5117_vm14 }
  0xea   : > { %3323 = vmatpush1.msk.msra.mxu1 %vm5042_vm1, %v1361_v6  ;;  %5112 = vst [vmem:[#allocation12_spill] sm:$0xff] %v5111_v56  ;;  %vm5113_vm1 = vcmask 916480  }
  0xeb   : > { %v1518_v53 = vpop.permute.xlu0 %1517  ;;  %3314 = vmatmul.mubr.msk.f32.gmra.mxu0 %vm5075_vm5, %v3302_v50  ;;  %v1520_v55 = vpop.permute.xlu1 %1519  ;;  %vm5114_vm2 = vmmov %vm5113_vm1 }
  0xec   : > { %v1525_v57 = vsel %vm5044_vm0, %v1518_v53, %v1520_v55  ;;  %v1541_v58 = vsel %vm5044_vm0, %v1520_v55, %v1518_v53  ;;  %1327 = vmatprep.mubr.f32.mxu0 %v5051_v8  ;;  %vm5115_vm0 = vcmp.lt.s32.totalorder %v3736_v14, 15 }
  0xed   : > { %3336 = vmatprep.subr.msk.mxu0 %vm4122_vm6, %v1541_v58 }
  0xee   : > { %3337 = vmatpush1.msk.msra.mxu0 %vm4131_vm15, %v1525_v57 }
  0xef   : > { %v1347_v60 = vpop.permute.xlu0 %1346  ;;  %3315 = vmatmul.mubr.msk.f32.gmra.mxu0 %vm5075_vm5, %v3303_v59  ;;  %v1349_v61 = vpop.permute.xlu1 %1348 }
  0xf0   : > { %v1360_v62 = vsel %vm5113_vm1, %v1347_v60, %v1349_v61  ;;  %v1376_v9 = vsel %vm5114_vm2, %v1349_v61, %v1347_v60  ;;  %1635 = vmatprep.mubr.f32.mxu0 %v5051_v8  ;;  %vm5120_vm2 = vcmp.lt.s32.totalorder %v3736_v14, 15 }
  0xf1   : > { %3324 = vmatprep.subr.msk.mxu1 %vm5115_vm0, %v1376_v9  ;;  %vm5119_vm0 = vmmov %vm5113_vm1 }
  0xf2   : > { %3325 = vmatpush1.msk.msra.mxu1 %vm5116_vm11, %v1360_v62 }
  0xf3   : > { %v1514_v10 = vpop.permute.xlu0 %1513  ;;  %v1516_v12 = vpop.permute.xlu1 %1515 }
  0xf4   : > { %v1524_v13 = vsel %vm5117_vm14, %v1514_v10, %v1516_v12  ;;  %v1540_v15 = vsel %vm5118_vm10, %v1516_v12, %v1514_v10  ;;  %vm5121_vm10 = vmmov %vm5116_vm11 }
  0xf5   : > { %3338 = vmatprep.subr.msk.mxu0 %vm4122_vm6, %v1540_v15  ;;  %vm5122_vm11 = vmmov %vm5117_vm14 }
  0xf6   : > { %3339 = vmatpush1.msk.msra.mxu0 %vm4131_vm15, %v1524_v13  ;;  %vm5123_vm14 = vmmov %vm5122_vm11 }
  0xf7   : > { %v1343_v16 = vpop.permute.xlu0 %1342  ;;  %v1345_v18 = vpop.permute.xlu1 %1344 }
  0xf8   : > { %v1359_v19 = vsel %vm5113_vm1, %v1343_v16, %v1345_v18  ;;  %v1375_v20 = vsel %vm5119_vm0, %v1345_v18, %v1343_v16  ;;  %vm5124_vm1 = vmmov %vm5122_vm11 }
  0xf9   : > { %3326 = vmatprep.subr.msk.mxu1 %vm5120_vm2, %v1375_v20  ;;  %vm5125_vm0 = vmmov %vm5124_vm1  ;;  %vm5126_vm2 = vcmask 138240  }
  0xfa   : > { %3327 = vmatpush1.msk.msra.mxu1 %vm5121_vm10, %v1359_v19  ;;  %vm5127_vm10 = vmmov %vm5126_vm2 }
  0xfb   : > { %v1510_v22 = vpop.permute.xlu0 %1509  ;;  %3328 = vmatmul.mubr.msk.f32.vlgmr.msra.gmra.mxu1 %vm5075_vm5, %v3316_v21 }
  0xfc   : > { %v1512_v23 = vpop.permute.xlu1 %1511  ;;  %1478 = vmatprep.mubr.f32.mxu1 %v5051_v8 }
  0xfd   : > { %v1523_v25 = vsel %vm5122_vm11, %v1510_v22, %v1512_v23  ;;  %v1539_v26 = vsel %vm5123_vm14, %v1512_v23, %v1510_v22  ;;  %vm5128_vm11 = vcmask 121856  }
  0xfe   : > { %3340 = vmatprep.subr.msk.mxu0 %vm4122_vm6, %v1539_v26  ;;  %vm5129_vm14 = vmmov %vm5128_vm11 }
  0xff   : > { %3341 = vmatpush1.msk.msra.mxu0 %vm4131_vm15, %v1523_v25  ;;  %v1506_v27 = vpop.permute.xlu0 %1505  ;;  %3329 = vmatmul.mubr.msk.f32.gmra.mxu1 %vm5075_vm5, %v3317_v24 }
 0x100   : > { %v1508_v28 = vpop.permute.xlu1 %1507  ;;  %1484 = vmatprep.mubr.f32.mxu1 %v5051_v8 }
 0x101   : > { %v1522_v31 = vsel %vm5124_vm1, %v1506_v27, %v1508_v28  ;;  %v1538_v32 = vsel %vm5125_vm0, %v1508_v28, %v1506_v27  ;;  %vm5130_vm1 = vcmask 7168  }
 0x102   : > { %3342 = vmatprep.subr.msk.mxu0 %vm4122_vm6, %v1538_v32  ;;  %vm5131_vm0 = vmmov %vm5130_vm1 }
 0x103   : > { %3343 = vmatpush1.msk.msra.mxu0 %vm4131_vm15, %v1522_v31  ;;  %3330 = vmatmul.mubr.msk.f32.gmra.mxu1 %vm5075_vm5, %v3318_v29 }
 0x104   : > { %3344 = vmatmul.mubr.msk.f32.vlgmr.msra.gmra.mxu0 %vm5075_vm5, %v3332_v34  ;;  %1490 = vmatprep.mubr.f32.mxu1 %v5051_v8 }
 0x105   : > { %1641 = vmatprep.mubr.f32.mxu0 %v5051_v8 }
 0x107   : > { %3331 = vmatmul.mubr.msk.f32.gmra.mxu1 %vm5075_vm5, %v3319_v35 }
 0x108   : > { %3345 = vmatmul.mubr.msk.f32.gmra.mxu0 %vm5075_vm5, %v3333_v36  ;;  %1857 = vmatprep.mubr.f32.mxu1 %v5051_v8 }
 0x109   : > { %1647 = vmatprep.mubr.f32.mxu0 %v5051_v8 }
 0x10c   : > { %3346 = vmatmul.mubr.msk.f32.gmra.mxu0 %vm5075_vm5, %v3334_v38 }
 0x10d   : > { %1653 = vmatprep.mubr.f32.mxu0 %v5051_v8 }
 0x110   : > { %3347 = vmatmul.mubr.msk.f32.gmra.mxu0 %vm5075_vm5, %v3335_v39 }
 0x111   : > { %1958 = vmatprep.mubr.f32.mxu0 %v5051_v8 }
 0x153   : > { %v452_v0 = vpop.f32.mrf.mxu0 }
 0x155   : > { %v454_v41 = vpop.f32.mrf.mxu0 }
 0x157   : > { %v4217_v42 = vpop.f32.mrf.mxu0 }
 0x159   : > { %v4219_v2 = vpop.f32.mrf.mxu0 }
 0x15b   : > { %v4221_v43 = vpop.f32.mrf.mxu0 }
 0x15d   : > { %v4223_v45 = vpop.f32.mrf.mxu0 }
 0x15f   : > { %v470_v1 = vpop.f32.mrf.mxu0 }
 0x161   : > { %v472_v46 = vpop.f32.mrf.mxu0 }
 0x16b   : > { %v553_v3 = vpop.f32.mrf.mxu1 }
 0x16d   : > { %v555_v4 = vpop.f32.mrf.mxu1 }
 0x16f   : > { %v559_v48 = vpop.f32.mrf.mxu1 }
 0x171   : > { %v561_v49 = vpop.f32.mrf.mxu1 }
 0x173   : > { %v708_v5 = vpop.f32.mrf.mxu0  ;;  %v4225_v6 = vpop.f32.mrf.mxu1 }
 0x175   : > { %v710_v7 = vpop.f32.mrf.mxu0  ;;  %v4227_v50 = vpop.f32.mrf.mxu1 }
 0x177   : > { %v714_v53 = vpop.f32.mrf.mxu0  ;;  %v571_v55 = vpop.f32.mrf.mxu1 }
 0x178   : > { %v572_v57 = vadd.f32 %v571_v55, %v470_v1 }
 0x179   : > { %v716_v58 = vpop.f32.mrf.mxu0  ;;  %v573_v59 = vpop.f32.mrf.mxu1 }
 0x17a   : > { %v574_v60 = vadd.f32 %v573_v59, %v472_v46 }
 0x17b   : > { %v4229_v61 = vpop.f32.mrf.mxu0 }
 0x17d   : > { %v4231_v62 = vpop.f32.mrf.mxu0 }
 0x17f   : > { %v726_v9 = vpop.f32.mrf.mxu0 }
 0x180   : > { %v4233_v10 = vadd.f32 %v726_v9, %v572_v57 }
 0x181   : > { %v728_v12 = vpop.f32.mrf.mxu0 }
 0x182   : > { %v738_v13 = vadd.f32 %v728_v12, %v574_v60  ;;  %v554_v60 = vadd.f32 %v553_v3, %v452_v0  ;;  %v556_v12 = vadd.f32 %v555_v4, %v454_v41  ;;  %v560_v41 = vadd.f32 %v559_v48, %v4217_v42 }
 0x183   : > { %v871_v15 = vpop.f32.mrf.mxu1  ;;  %v985_v16 = vpop.f32.mrf.mxu0 }
 0x184   : > { %v731_v56 = vadd.f32 %v708_v5, %v554_v60  ;;  %v562_v5 = vadd.f32 %v561_v49, %v4219_v2 }
 0x185   : > { %v873_v18 = vpop.f32.mrf.mxu1  ;;  %v987_v19 = vpop.f32.mrf.mxu0 }
 0x186   : > { %v734_v30 = vadd.f32 %v716_v58, %v562_v5 }
 0x187   : > { %v877_v20 = vpop.f32.mrf.mxu1  ;;  %v991_v21 = vpop.f32.mrf.mxu0 }
 0x189   : > { %v879_v22 = vpop.f32.mrf.mxu1  ;;  %v993_v23 = vpop.f32.mrf.mxu0 }
 0x18b   : > { %v4235_v24 = vpop.f32.mrf.mxu1  ;;  %v4237_v25 = vpop.f32.mrf.mxu0 }
 0x18d   : > { %v4239_v26 = vpop.f32.mrf.mxu1  ;;  %v4241_v27 = vpop.f32.mrf.mxu0 }
 0x18f   : > { %v4243_v28 = vpop.f32.mrf.mxu1  ;;  %v4245_v29 = vpop.f32.mrf.mxu0 }
 0x191   : > { %v891_v31 = vpop.f32.mrf.mxu1  ;;  %v1005_v32 = vpop.f32.mrf.mxu0 }
 0x192   : > { %v901_v34 = vadd.f32 %v891_v31, %v738_v13  ;;  %v732_v13 = vadd.f32 %v710_v7, %v556_v12 }
 0x194   : > { %v4247_v35 = vadd.f32 %v1005_v32, %v901_v34  ;;  %v894_v32 = vadd.f32 %v871_v15, %v731_v56  ;;  %v895_v11 = vadd.f32 %v873_v18, %v732_v13  ;;  %v733_v15 = vadd.f32 %v714_v53, %v560_v41 }
 0x196   : > { %v1008_v47 = vadd.f32 %v985_v16, %v894_v32  ;;  %v1009_v3 = vadd.f32 %v987_v19, %v895_v11  ;;  %v896_v51 = vadd.f32 %v877_v20, %v733_v15 }
 0x198   : > { %v1010_v2 = vadd.f32 %v991_v21, %v896_v51  ;;  %v568_v51 = vadd.f32 %v4227_v50, %v4223_v45 }
 0x19b   : > { %v1148_v36 = vpop.f32.mrf.mxu1 }
 0x19c   : > { %v1171_v4 = vadd.f32 %v1148_v36, %v1008_v47  ;;  %v897_v47 = vadd.f32 %v879_v22, %v734_v30 }
 0x19d   : > { %v1150_v38 = vpop.f32.mrf.mxu1 }
 0x19e   : > { %v1172_v60 = vadd.f32 %v1150_v38, %v1009_v3  ;;  %v1011_v49 = vadd.f32 %v993_v23, %v897_v47 }
 0x19f   : > { %v1154_v1 = vpop.f32.mrf.mxu1 }
 0x1a0   : > { %v1173_v53 = vadd.f32 %v1154_v1, %v1010_v2 }
 0x1a1   : > { %v1156_v55 = vpop.f32.mrf.mxu1 }
 0x1a2   : > { %v1174_v30 = vadd.f32 %v1156_v55, %v1011_v49 }
 0x1a3   : > { %v1311_v39 = vpop.f32.mrf.mxu0  ;;  %v4249_v59 = vpop.f32.mrf.mxu1 }
 0x1a4   : > { %v1334_v7 = vadd.f32 %v1311_v39, %v1171_v4 }
 0x1a5   : > { %v1313_v46 = vpop.f32.mrf.mxu0  ;;  %v4251_v8 = vpop.f32.mrf.mxu1 }
 0x1a6   : > { %v1335_v33 = vadd.f32 %v1313_v46, %v1172_v60 }
 0x1a7   : > { %v1317_v57 = vpop.f32.mrf.mxu0  ;;  %v4255_v31 = vpop.f32.mrf.mxu1 }
 0x1a8   : > { %v1336_v58 = vadd.f32 %v1317_v57, %v1173_v53 }
 0x1a9   : > { %v1319_v9 = vpop.f32.mrf.mxu0  ;;  %v4259_v63 = vpop.f32.mrf.mxu1 }
 0x1aa   : > { %v1337_v20 = vadd.f32 %v1319_v9, %v1174_v30 }
 0x1ab   : > { %v4253_v52 = vpop.f32.mrf.mxu0 }
 0x1ad   : > { %v4257_v34 = vpop.f32.mrf.mxu0 }
 0x1af   : > { %v4261_v44 = vpop.f32.mrf.mxu0 }
 0x1b1   : > { %v4265_v12 = vpop.f32.mrf.mxu0 }
 0x1bb   : > { %v1474_v0 = vpop.f32.mrf.mxu1 }
 0x1bc   : > { %v1497_v18 = vadd.f32 %v1474_v0, %v1334_v7 }
 0x1bd   : > { %v1476_v56 = vpop.f32.mrf.mxu1 }
 0x1be   : > { %v1498_v16 = vadd.f32 %v1476_v56, %v1335_v33 }
 0x1bf   : > { %v1480_v48 = vpop.f32.mrf.mxu1 }
 0x1c0   : > { %v1499_v21 = vadd.f32 %v1480_v48, %v1336_v58 }
 0x1c1   : > { %v1482_v19 = vpop.f32.mrf.mxu1 }
 0x1c2   : > { %v1500_v36 = vadd.f32 %v1482_v19, %v1337_v20 }
 0x1c3   : > { %v1486_v1 = vpop.f32.mrf.mxu1 }
 0x1c4   : > { %v1637_v13 = vpop.f32.mrf.mxu0 }
 0x1c5   : > { %v1660_v32 = vadd.f32 %v1637_v13, %v1497_v18 }
 0x1c6   : > { %v1639_v54 = vpop.f32.mrf.mxu0 }
 0x1c7   : > { %v4267_v40 = vmax.f32 %v1660_v32, 0.0  ;;  %v1661_v11 = vadd.f32 %v1639_v54, %v1498_v16  ;;  %v566_v54 = vadd.f32 %v4225_v6, %v4221_v43  ;;  %v736_v43 = vadd.f32 %v4231_v62, %v568_v51 }
 0x1c8   : > { %v1643_v33 = vpop.f32.mrf.mxu0 }
 0x1c9   : > { %v4269_v42 = vmax.f32 %v1661_v11, 0.0  ;;  %1744 = vrot.lane.b32.xlu1 %v4267_v40, %s3533_s24  ;;  %v735_v23 = vadd.f32 %v4229_v61, %v566_v54  ;;  %v1662_v38 = vadd.f32 %v1643_v33, %v1499_v21  ;;  %v899_v61 = vadd.f32 %v4239_v26, %v736_v43 }
 0x1ca   : > { %v1645_v22 = vpop.f32.mrf.mxu0 }
 0x1cb   : > { %1732 = vrot.lane.b32.xlu0 %v4269_v42, %s3533_s24  ;;  %v1663_v6 = vadd.f32 %v1645_v22, %v1500_v36  ;;  %v898_v45 = vadd.f32 %v4235_v24, %v735_v23  ;;  %v4292_v50 = vmax.f32 %v1662_v38, 0.0  ;;  %v1013_v24 = vadd.f32 %v4241_v27, %v899_v61 }
 0x1cc   : > { %v1649_v55 = vpop.f32.mrf.mxu0 }
 0x1cd   : > { %1696 = vrot.lane.b32.xlu1 %v4267_v40, %s3535_s25  ;;  %v4297_v39 = vmax.f32 %v1663_v6, 0.0  ;;  %v1012_v62 = vadd.f32 %v4237_v25, %v898_v45  ;;  %v1176_v26 = vadd.f32 %v4251_v8, %v1013_v24  ;;  %v1488_v25 = vpop.f32.mrf.mxu1  ;;  %v900_v8 = vadd.f32 %v4243_v28, %v4233_v10 }
 0x1ce   : > { %v1651_v27 = vpop.f32.mrf.mxu0 }
 0x1cf   : > { %1680 = vrot.lane.b32.xlu0 %v4269_v42, %s3535_s25  ;;  %v1175_v46 = vadd.f32 %v4249_v59, %v1012_v62  ;;  %v1339_v9 = vadd.f32 %v4257_v34, %v1176_v26  ;;  %v1014_v4 = vadd.f32 %v4245_v29, %v900_v8  ;;  %v1492_v10 = vpop.f32.mrf.mxu1  ;;  %v1178_v29 = vadd.f32 %v4259_v63, %v4247_v35 }
 0x1d0   : > { %v1655_v60 = vpop.f32.mrf.mxu0 }
 0x1d1   : > { %1995 = vrot.lane.b32.xlu1 %v4267_v40, %s3536_s26  ;;  %v1338_v57 = vadd.f32 %v4253_v52, %v1175_v46  ;;  %v1502_v59 = vadd.f32 %v1488_v25, %v1339_v9  ;;  %v1177_v5 = vadd.f32 %v4255_v31, %v1014_v4  ;;  %v1494_v31 = vpop.f32.mrf.mxu1  ;;  %v1341_v15 = vadd.f32 %v4265_v12, %v1178_v29 }
 0x1d3   : > { %1983 = vrot.lane.b32.xlu0 %v4269_v42, %s3536_s26  ;;  %v1501_v0 = vadd.f32 %v1486_v1, %v1338_v57  ;;  %v1665_v3 = vadd.f32 %v1651_v27, %v1502_v59  ;;  %v1340_v28 = vadd.f32 %v4261_v44, %v1177_v5  ;;  %v1657_v44 = vpop.f32.mrf.mxu0  ;;  %v1504_v18 = vadd.f32 %v1494_v31, %v1341_v15  ;;  %v3349_v15 = vld [vmem:[%s5029_s2 + $0x28] sm:$0xff] }
 0x1d4   : > { %v5148_v31 = vmov 0.0  }
 0x1d5   : > { %2153 = vrot.lane.b32.xlu1 %v4267_v40, %s3537_s27  ;;  %v1664_v41 = vadd.f32 %v1649_v55, %v1501_v0  ;;  %v4325_v34 = vmax.f32 %v1665_v3, 0.0  ;;  %v1503_v7 = vadd.f32 %v1492_v10, %v1340_v28  ;;  %v1667_v16 = vadd.f32 %v1657_v44, %v1504_v18 }
 0x1d7   : > { %2141 = vrot.lane.b32.xlu0 %v4269_v42, %s3537_s27  ;;  %v4321_v52 = vmax.f32 %v1664_v41, 0.0  ;;  %v1666_v56 = vadd.f32 %v1655_v60, %v1503_v7  ;;  %v4355_v63 = vmax.f32 %v1667_v16, 0.0  ;;  %v3348_v60 = vld [vmem:[%s5029_s2 + $0x20] sm:$0xff] }
 0x1d9   : > { %1746 = vrot.lane.b32.xlu1 %v4292_v50, %s3533_s24  ;;  %v4347_v13 = vmax.f32 %v1666_v56, 0.0 }
 0x1db   : > { %1734 = vrot.lane.b32.xlu0 %v4297_v39, %s3533_s24 }
 0x1dd   : > { %1698 = vrot.lane.b32.xlu1 %v4292_v50, %s3535_s25 }
 0x1df   : > { %1682 = vrot.lane.b32.xlu0 %v4297_v39, %s3535_s25 }
 0x1e1   : > { %1997 = vrot.lane.b32.xlu1 %v4292_v50, %s3536_s26 }
 0x1e3   : > { %1985 = vrot.lane.b32.xlu0 %v4297_v39, %s3536_s26 }
 0x1e5   : > { %2155 = vrot.lane.b32.xlu1 %v4292_v50, %s3537_s27 }
 0x1e7   : > { %2143 = vrot.lane.b32.xlu0 %v4297_v39, %s3537_s27 }
 0x1e9   : > { %1748 = vrot.lane.b32.xlu1 %v4321_v52, %s3533_s24 }
 0x1eb   : > { %1736 = vrot.lane.b32.xlu0 %v4325_v34, %s3533_s24 }
 0x1ed   : > { %1700 = vrot.lane.b32.xlu1 %v4321_v52, %s3535_s25 }
 0x1ef   : > { %1684 = vrot.lane.b32.xlu0 %v4325_v34, %s3535_s25 }
 0x1f1   : > { %1999 = vrot.lane.b32.xlu1 %v4321_v52, %s3536_s26 }
 0x1f3   : > { %1987 = vrot.lane.b32.xlu0 %v4325_v34, %s3536_s26 }
 0x1f5   : > { %2157 = vrot.lane.b32.xlu1 %v4321_v52, %s3537_s27 }
 0x1f7   : > { %2145 = vrot.lane.b32.xlu0 %v4325_v34, %s3537_s27 }
 0x1f9   : > { %1750 = vrot.lane.b32.xlu1 %v4347_v13, %s3533_s24 }
 0x1fb   : > { %2425 = vrot.lane.b32.xlu0 %v4347_v13, %s3538_s28 }
 0x1fd   : > { %1702 = vrot.lane.b32.xlu1 %v4347_v13, %s3535_s25 }
 0x1ff   : > { %1738 = vrot.lane.b32.xlu0 %v4355_v63, %s3533_s24 }
 0x201   : > { %2001 = vrot.lane.b32.xlu1 %v4347_v13, %s3536_s26 }
 0x203   : > { %2421 = vrot.lane.b32.xlu0 %v4321_v52, %s3538_s28 }
 0x205   : > { %2159 = vrot.lane.b32.xlu1 %v4347_v13, %s3537_s27 }
 0x207   : > { %2583 = vrot.lane.b32.xlu0 %v4347_v13, %s3539_s29 }
 0x209   : > { %2423 = vrot.lane.b32.xlu1 %v4325_v34, %s3538_s28 }
 0x20b   : > { %1686 = vrot.lane.b32.xlu0 %v4355_v63, %s3535_s25 }
 0x20d   : > { %2419 = vrot.lane.b32.xlu1 %v4297_v39, %s3538_s28 }
 0x20f   : > { %1989 = vrot.lane.b32.xlu0 %v4355_v63, %s3536_s26 }
 0x211   : > { %2581 = vrot.lane.b32.xlu1 %v4325_v34, %s3539_s29 }
 0x213   : > { %2417 = vrot.lane.b32.xlu0 %v4292_v50, %s3538_s28 }
 0x215   : > { %2415 = vrot.lane.b32.xlu1 %v4269_v42, %s3538_s28 }
 0x217   : > { %2579 = vrot.lane.b32.xlu0 %v4321_v52, %s3539_s29 }
 0x219   : > { %2577 = vrot.lane.b32.xlu1 %v4297_v39, %s3539_s29 }
 0x21b   : > { %2413 = vrot.lane.b32.xlu0 %v4267_v40, %s3538_s28 }
 0x21d   : > { %2573 = vrot.lane.b32.xlu1 %v4269_v42, %s3539_s29 }
 0x21f   : > { %2147 = vrot.lane.b32.xlu0 %v4355_v63, %s3537_s27 }
 0x221   : > { %2739 = vrot.lane.b32.xlu1 %v4325_v34, %s3540_s30 }
 0x223   : > { %2575 = vrot.lane.b32.xlu0 %v4292_v50, %s3539_s29 }
 0x225   : > { %2735 = vrot.lane.b32.xlu1 %v4297_v39, %s3540_s30 }
 0x227   : > { %2571 = vrot.lane.b32.xlu0 %v4267_v40, %s3539_s29 }
 0x229   : > { %2427 = vrot.lane.b32.xlu1 %v4355_v63, %s3538_s28 }
 0x22b   : > { %2741 = vrot.lane.b32.xlu0 %v4347_v13, %s3540_s30 }
 0x22d   : > { %2585 = vrot.lane.b32.xlu1 %v4355_v63, %s3539_s29 }
 0x22f   : > { %2737 = vrot.lane.b32.xlu0 %v4321_v52, %s3540_s30 }
 0x231   : > { %2897 = vrot.lane.b32.xlu1 %v4325_v34, %s3541_s6 }
 0x233   : > { %2899 = vrot.lane.b32.xlu0 %v4347_v13, %s3541_s6 }
 0x235   : > { %2731 = vrot.lane.b32.xlu1 %v4269_v42, %s3540_s30 }
 0x237   : > { %2733 = vrot.lane.b32.xlu0 %v4292_v50, %s3540_s30 }
 0x239   : > { %2743 = vrot.lane.b32.xlu1 %v4355_v63, %s3540_s30 }
 0x23b   : > { %v1745_v35 = vpop.permute.xlu1 %1744  ;;  %2895 = vrot.lane.b32.xlu0 %v4321_v52, %s3541_s6 }
 0x23d   : > { %v1733_v12 = vpop.permute.xlu0 %1732  ;;  %2901 = vrot.lane.b32.xlu1 %v4355_v63, %s3541_s6 }
 0x23f   : > { %v1697_v32 = vpop.permute.xlu1 %1696  ;;  %2729 = vrot.lane.b32.xlu0 %v4267_v40, %s3540_s30  ;;  %s5000_s30 = scalar_lea.vmem %s5032_s5, %s3482_s20 }
 0x241   : > { %v1681_v11 = vpop.permute.xlu0 %1680  ;;  %2893 = vrot.lane.b32.xlu1 %v4297_v39, %s3541_s6 }
 0x242   : > { %v4428_v47 = vsel %vm5126_vm2, %v1697_v32, %v1681_v11  ;;  %v4431_v2 = vsel %vm5127_vm10, %v1681_v11, %v1697_v32  ;;  %vm5132_vm2 = vcmask 130048   ;;  %v3350_v11 = vld [vmem:[%s5029_s2 + $0x30] sm:$0xff] }
 0x243   : > { %v1996_v48 = vpop.permute.xlu1 %1995  ;;  %2891 = vrot.lane.b32.xlu0 %v4292_v50, %s3541_s6  ;;  %vm5133_vm10 = vmmov %vm5132_vm2 }
 0x245   : > { %v1984_v49 = vpop.permute.xlu0 %1983  ;;  %2889 = vrot.lane.b32.xlu1 %v4269_v42, %s3541_s6 }
 0x246   : > { %v4438_v53 = vsel %vm5128_vm11, %v1996_v48, %v1984_v49  ;;  %v4441_v33 = vsel %vm5129_vm14, %v1984_v49, %v1996_v48  ;;  %vm5134_vm11 = vcmp.ge.s32.totalorder %v3736_v14, 1  ;;  %vm5135_vm14 = vmmov %vm5132_vm2 }
 0x247   : > { %v2154_v54 = vpop.permute.xlu1 %2153  ;;  %2887 = vrot.lane.b32.xlu0 %v4267_v40, %s3541_s6  ;;  %vm5138_vm5 = vmmov %vm5134_vm11 }
 0x249   : > { %v2142_v30 = vpop.permute.xlu0 %2141 }
 0x24a   : > { %v4446_v58 = vsel %vm5130_vm1, %v2154_v54, %v2142_v30  ;;  %v4449_v19 = vsel %vm5131_vm0, %v2142_v30, %v2154_v54  ;;  %vm5136_vm1 = vcmp.ge.s32.totalorder %v3738_v17, 1  ;;  %vm5137_vm0 = vmmov %vm5132_vm2 }
 0x24b   : > { %v1747_v51 = vpop.permute.xlu1 %1746  ;;  %vm5139_vm15 = vmmov %vm5137_vm0 }
 0x24d   : > { %v1735_v20 = vpop.permute.xlu0 %1734 }
 0x24e   : > { %v1753_v4 = vsel %vm5139_vm15, %v1747_v51, %v1735_v20 }
 0x24f   : > { %v1699_v21 = vpop.permute.xlu1 %1698 }
 0x251   : > { %v1683_v22 = vpop.permute.xlu0 %1682 }
 0x253   : > { %v4451_v23 = vpop.permute.xlu1 %1997 }
 0x255   : > { %v4453_v36 = vpop.permute.xlu0 %1985 }
 0x257   : > { %v4455_v38 = vpop.permute.xlu1 %2155 }
 0x259   : > { %v4457_v43 = vpop.permute.xlu0 %2143 }
 0x25b   : > { %v1749_v6 = vpop.permute.xlu1 %1748 }
 0x25d   : > { %v1737_v45 = vpop.permute.xlu0 %1736 }
 0x25e   : > { %v1754_v41 = vsel %vm5135_vm14, %v1749_v6, %v1737_v45  ;;  %v1766_v3 = vsel %vm5137_vm0, %v1737_v45, %v1749_v6  ;;  %vm5143_vm14 = vmmov %vm5137_vm0 }
 0x25f   : > { %v1701_v61 = vpop.permute.xlu1 %1700  ;;  %v1752_v28 = vsel %vm5143_vm14, %v1745_v35, %v1733_v12 }
 0x261   : > { %v1685_v62 = vpop.permute.xlu0 %1684 }
 0x263   : > { %v4459_v1 = vpop.permute.xlu1 %1999 }
 0x265   : > { %v1988_v24 = vpop.permute.xlu0 %1987 }
 0x267   : > { %v4461_v46 = vpop.permute.xlu1 %2157 }
 0x269   : > { %v4463_v55 = vpop.permute.xlu0 %2145 }
 0x26b   : > { %v1751_v26 = vpop.permute.xlu1 %1750 }
 0x26d   : > { %v4465_v57 = vpop.permute.xlu0 %2425 }
 0x26f   : > { %v1703_v25 = vpop.permute.xlu1 %1702 }
 0x271   : > { %v1739_v9 = vpop.permute.xlu0 %1738 }
 0x272   : > { %v1755_v0 = vsel %vm5132_vm2, %v1751_v26, %v1739_v9  ;;  %v1767_v27 = vsel %vm5133_vm10, %v1739_v9, %v1751_v26  ;;  %vm5140_vm2 = vmmov %vm5136_vm1  ;;  %v1728_v26 = vld [vmem:[%s5029_s2] sm:$0xff] }
 0x273   : > { %v2002_v59 = vpop.permute.xlu1 %2001  ;;  %3352 = vmatprep.subr.msk.mxu1 %vm5134_vm11, %v1755_v0  ;;  %vm5141_vm10 = vmmov %vm5137_vm0  ;;  %v1730_v0 = vld [vmem:[%s5029_s2 + $0x10] sm:$0xff] }
 0x274   : > { %3353 = vmatpush1.msk.msra.mxu1 %vm5136_vm1, %v1767_v27  ;;  %v1765_v5 = vsel %vm5141_vm10, %v1735_v20, %v1747_v51  ;;  %vm5142_vm11 = vmmov %vm5138_vm5  ;;  %vm5149_vm10 = vcmask 138240  }
 0x275   : > { %3354 = vmatprep.subr.msk.mxu1 %vm5138_vm5, %v1754_v41  ;;  %v4477_v8 = vpop.permute.xlu0 %2421  ;;  %vm5144_vm5 = vmmov %vm5137_vm0 }
 0x276   : > { %3355 = vmatpush1.msk.msra.mxu1 %vm5140_vm2, %v1766_v3  ;;  %v1764_v7 = vsel %vm5144_vm5, %v1733_v12, %v1745_v35  ;;  %vm5145_vm15 = vmmov %vm5142_vm11  ;;  %vm5147_vm2 = vcmask 261120  }
 0x277   : > { %v4483_v10 = vpop.permute.xlu1 %2159  ;;  %3356 = vmatprep.subr.msk.mxu1 %vm5142_vm11, %v1753_v4  ;;  %vm5146_vm0 = vmmov %vm5136_vm1 }
 0x278   : > { %3357 = vmatpush1.msk.msra.mxu1 %vm5136_vm1, %v1765_v5  ;;  %vm5150_vm11 = vmmov %vm5149_vm10 }
 0x279   : > { %3358 = vmatprep.subr.msk.mxu1 %vm5145_vm15, %v1752_v28  ;;  %v4496_v29 = vpop.permute.xlu0 %2583  ;;  %vm5151_vm14 = vmmov %vm5147_vm2  ;;  %v3408_v28 = vld [vmem:[%s5029_s2 + $0x80] sm:$0xff] }
 0x27a   : > { %3359 = vmatpush1.msk.msra.mxu1 %vm5146_vm0, %v1764_v7  ;;  %vm5152_vm1 = vmmov %vm5149_vm10  ;;  %vm5156_vm0 = vcmask 121856  }
 0x27b   : > { %v4500_v56 = vpop.permute.xlu1 %2423  ;;  %3360 = vmatmul.mubr.msk.f32.vlgmr.msra.gmra.mxu1 %vm5147_vm2, %v3348_v60  ;;  %v1706_v12 = vsel %vm5152_vm1, %v1701_v61, %v1685_v62  ;;  %vm5154_vm5 = vmmov %vm5152_vm1 }
 0x27c   : > { %1863 = vmatprep.mubr.f32.mxu1 %v5148_v31  ;;  %v1718_v48 = vsel %vm5154_vm5, %v1685_v62, %v1701_v61  ;;  %vm5155_vm15 = vmmov %vm5152_vm1 }
 0x27d   : > { %v1687_v44 = vpop.permute.xlu0 %1686  ;;  %v1705_v54 = vsel %vm5155_vm15, %v1699_v21, %v1683_v22  ;;  %vm5157_vm2 = vmmov %vm5156_vm0 }
 0x27e   : > { %v1707_v18 = vsel %vm5149_vm10, %v1703_v25, %v1687_v44  ;;  %v1719_v16 = vsel %vm5150_vm11, %v1687_v44, %v1703_v25  ;;  %vm5158_vm10 = vmmov %vm5152_vm1  ;;  %v5188_v44 = vld [vmem:[#allocation6_spill] sm:$0xff] }
 0x27f   : > { %v4509_v35 = vpop.permute.xlu1 %2419  ;;  %3361 = vmatmul.mubr.msk.f32.gmra.mxu1 %vm5151_vm14, %v3349_v15  ;;  %3364 = vmatprep.subr.msk.mxu0 %vm3794_vm7, %v1707_v18  ;;  %v1717_v20 = vsel %vm5158_vm10, %v1683_v22, %v1699_v21  ;;  %vm5159_vm11 = vmmov %vm5151_vm14  ;;  %v3351_v22 = vld [vmem:[%s5029_s2 + $0x38] sm:$0xff]  ;;  %vm5171_vm10 = vcmask 7168  }
 0x280   : > { %3365 = vmatpush1.msk.msra.mxu0 %vm3802_vm8, %v1719_v16  ;;  %1869 = vmatprep.mubr.f32.mxu1 %v5148_v31  ;;  %vm5161_vm14 = vmmov %vm5156_vm0 }
 0x281   : > { %3366 = vmatprep.subr.msk.mxu0 %vm3794_vm7, %v1706_v12  ;;  %v1990_v49 = vpop.permute.xlu0 %1989  ;;  %v2005_v61 = vsel %vm5161_vm14, %v4459_v1, %v1988_v24  ;;  %vm5163_vm1 = vmmov %vm5156_vm0 }
 0x282   : > { %v2006_v30 = vsel %vm5156_vm0, %v2002_v59, %v1990_v49  ;;  %v2018_v51 = vsel %vm5157_vm2, %v1990_v49, %v2002_v59  ;;  %3367 = vmatpush1.msk.msra.mxu0 %vm3802_vm8, %v1718_v48  ;;  %v2017_v25 = vsel %vm5163_vm1, %v1988_v24, %v4459_v1  ;;  %vm5165_vm5 = vmmov %vm5159_vm11  ;;  %v2016_v1 = vsel %vm5156_vm0, %v4453_v36, %v4451_v23  ;;  %v1729_v24 = vld [vmem:[%s5029_s2 + $0x8] sm:$0xff]  ;;  %v5196_v49 = vld [vmem:[#allocation9_spill] sm:$0xff] }
 0x283   : > { %v4530_v6 = vpop.permute.xlu1 %2581  ;;  %3362 = vmatmul.mubr.msk.f32.gmra.mxu1 %vm5159_vm11, %v3350_v11  ;;  %3368 = vmatprep.subr.msk.mxu0 %vm3794_vm7, %v1705_v54  ;;  %vm5166_vm15 = vmmov %vm5165_vm5 }
 0x284   : > { %3380 = vmatprep.subr.msk.mxu1 %vm3840_vm12, %v2006_v30  ;;  %3369 = vmatpush1.msk.msra.mxu0 %vm3802_vm8, %v1717_v20  ;;  %vm5168_vm2 = vmmov %vm5165_vm5  ;;  %v5199_v30 = vld [vmem:[#allocation10_spill] sm:$0xff] }
 0x285   : > { %3381 = vmatpush1.msk.msra.mxu1 %vm3848_vm13, %v2018_v51  ;;  %3370 = vmatprep.subr.msk.mxu0 %vm3794_vm7, %v4428_v47  ;;  %v4546_v21 = vpop.permute.xlu0 %2417  ;;  %vm5164_vm7 = vmmov %vm5156_vm0  ;;  %v3410_v51 = vld [vmem:[%s5029_s2 + $0x90] sm:$0xff] }
 0x286   : > { %3382 = vmatprep.subr.msk.mxu1 %vm3840_vm12, %v2005_v61  ;;  %1875 = vmatprep.mubr.f32.mxu1 %v5148_v31  ;;  %v2004_v47 = vsel %vm5164_vm7, %v4451_v23, %v4453_v36  ;;  %v3376_v23 = vld [vmem:[%s5029_s2 + $0x40] sm:$0xff]  ;;  %vm5172_vm11 = vmmov %vm5171_vm10 }
 0x287   : > { %3371 = vmatpush1.msk.msra.mxu0 %vm3802_vm8, %v4431_v2  ;;  %3383 = vmatpush1.msk.msra.mxu1 %vm3848_vm13, %v2017_v25  ;;  %v4564_v37 = vpop.permute.xlu1 %2415  ;;  %vm5167_vm8 = vmmov %vm5165_vm5  ;;  %v3411_v25 = vld [vmem:[%s5029_s2 + $0x98] sm:$0xff] }
 0x288   : > { %3363 = vmatmul.mubr.msk.f32.gmra.mxu1 %vm5165_vm5, %v3351_v22  ;;  %3372 = vmatmul.mubr.msk.f32.vlgmr.msra.gmra.mxu0 %vm5166_vm15, %v1728_v26  ;;  %vm5173_vm14 = vmmov %vm5168_vm2 }
 0x289   : > { %3384 = vmatprep.subr.msk.mxu1 %vm3840_vm12, %v2004_v47  ;;  %v4576_v2 = vpop.permute.xlu0 %2579  ;;  %1964 = vmatprep.mubr.f32.mxu0 %v5148_v31  ;;  %vm5174_vm1 = vmmov %vm5168_vm2 }
 0x28a   : > { %3385 = vmatpush1.msk.msra.mxu1 %vm3848_vm13, %v2016_v1  ;;  %2108 = vmatprep.mubr.f32.mxu1 %v5148_v31  ;;  %vm5176_vm7 = vmmov %vm5171_vm10 }
 0x28b   : > { %3386 = vmatprep.subr.msk.mxu1 %vm3840_vm12, %v4438_v53  ;;  %v4591_v36 = vpop.permute.xlu1 %2577  ;;  %v3377_v53 = vld [vmem:[%s5029_s2 + $0x48] sm:$0xff]  ;;  %vm5169_vm12 = vmmov %vm5168_vm2 }
 0x28c   : > { %3387 = vmatpush1.msk.msra.mxu1 %vm3848_vm13, %v4441_v33  ;;  %3373 = vmatmul.mubr.msk.f32.gmra.mxu0 %vm5167_vm8, %v1729_v24  ;;  %vm5170_vm13 = vmmov %vm5168_vm2 }
 0x28d   : > { %3388 = vmatmul.mubr.msk.f32.vlgmr.msra.gmra.mxu1 %vm5168_vm2, %v3376_v23  ;;  %2340 = vmatprep.subr.mxu1 %v4355_v63  ;;  %v4599_v9 = vpop.permute.xlu0 %2413  ;;  %v1731_v63 = vld [vmem:[%s5029_s2 + $0x18] sm:$0xff]  ;;  %vm5178_vm5 = vmmov %vm5176_vm7  ;;  %vm5182_vm2 = vcmask 1039360  }
 0x28e   : > { %2341 = vmatpush1.msra.mxu1 %v4347_v13  ;;  %1970 = vmatprep.mubr.f32.mxu0 %v5148_v31  ;;  %v2175_v3 = vsel %vm5178_vm5, %v4463_v55, %v4461_v46  ;;  %vm5179_vm15 = vmmov %vm5178_vm5  ;;  %v2445_v54 = vsel %vm5182_vm2, %v4564_v37, %v4599_v9 }
 0x28f   : > { %2342 = vmatprep.subr.mxu1 %v4325_v34  ;;  %2114 = vmatprep.mubr.f32.mxu1 %v5148_v31  ;;  %v4611_v33 = vpop.permute.xlu1 %2573  ;;  %v2162_v5 = vsel %vm5179_vm15, %v4455_v38, %v4457_v43  ;;  %vm5180_vm0 = vmmov %vm5178_vm5 }
 0x290   : > { %2343 = vmatpush1.msra.mxu1 %v4321_v52  ;;  %3374 = vmatmul.mubr.msk.f32.gmra.mxu0 %vm5169_vm12, %v1730_v0  ;;  %v3378_v52 = vld [vmem:[%s5029_s2 + $0x50] sm:$0xff]  ;;  %vm5181_vm8 = vmmov %vm5174_vm1 }
 0x291   : > { %3389 = vmatmul.mubr.msk.f32.gmra.mxu1 %vm5170_vm13, %v3377_v53  ;;  %2344 = vmatprep.subr.mxu1 %v4297_v39  ;;  %v2148_v13 = vpop.permute.xlu0 %2147  ;;  %vm5183_vm12 = vmmov %vm5182_vm2 }
 0x292   : > { %2345 = vmatpush1.msra.mxu1 %v4292_v50  ;;  %v2164_v34 = vsel %vm5171_vm10, %v4483_v10, %v2148_v13  ;;  %1976 = vmatprep.mubr.f32.mxu0 %v5148_v31  ;;  %v2176_v39 = vsel %vm5172_vm11, %v2148_v13, %v4483_v10  ;;  %v2174_v10 = vsel %vm5180_vm0, %v4457_v43, %v4455_v38  ;;  %vm5184_vm13 = vmmov %vm5174_vm1  ;;  %vm5190_vm11 = vcmask 924672  }
 0x293   : > { %2346 = vmatprep.subr.mxu1 %v4269_v42  ;;  %2120 = vmatprep.mubr.f32.mxu1 %v5148_v31  ;;  %v4631_v27 = vpop.permute.xlu1 %2739  ;;  %v2163_v42 = vsel %vm5176_vm7, %v4461_v46, %v4463_v55  ;;  %v3392_v55 = vld [vmem:[%s5029_s2 + $0x60] sm:$0xff]  ;;  %vm5185_vm10 = vmmov %vm5174_vm1  ;;  %vm5197_vm0 = vnez %v5196_v49 }
 0x294   : > { %2347 = vmatpush1.msra.mxu1 %v4267_v40  ;;  %3375 = vmatmul.mubr.msk.f32.gmra.mxu0 %vm5173_vm14, %v1731_v63  ;;  %v3379_v40 = vld [vmem:[%s5029_s2 + $0x58] sm:$0xff]  ;;  %vm5191_vm14 = vmmov %vm5182_vm2 }
 0x295   : > { %3390 = vmatmul.mubr.msk.f32.gmra.mxu1 %vm5174_vm1, %v3378_v52  ;;  %3396 = vmatprep.subr.msk.mxu0 %vm3773_vm3, %v2164_v34  ;;  %v4638_v59 = vpop.permute.xlu0 %2575  ;;  %v2431_v12 = vsel %vm5191_vm14, %v4477_v8, %v4500_v56  ;;  %vm5192_vm1 = vmmov %vm5190_vm11  ;;  %v3433_v52 = vld [vmem:[%s5029_s2 + $0xc8] sm:$0xff] }
 0x296   : > { %3397 = vmatpush1.msk.msra.mxu0 %vm3777_vm4, %v2176_v39  ;;  %2126 = vmatprep.mubr.f32.mxu1 %v5148_v31  ;;  %vm5193_vm7 = vmmov %vm5181_vm8 }
 0x297   : > { %3398 = vmatprep.subr.msk.mxu0 %vm3773_vm3, %v2163_v42  ;;  %v4654_v4 = vpop.permute.xlu1 %2735  ;;  %2266 = vmatprep.mubr.f32.mxu0 %v5148_v31  ;;  %vm5194_vm5 = vmmov %vm5193_vm7 }
 0x298   : > { %3399 = vmatpush1.msk.msra.mxu0 %vm3777_vm4, %v2175_v3  ;;  %vm5195_vm15 = vmmov %vm5182_vm2 }
 0x299   : > { %3391 = vmatmul.mubr.msk.f32.gmra.mxu1 %vm5181_vm8, %v3379_v40  ;;  %3400 = vmatprep.subr.msk.mxu0 %vm3773_vm3, %v2162_v5  ;;  %v2572_v46 = vpop.permute.xlu0 %2571  ;;  %v2446_v48 = vsel %vm5195_vm15, %v4509_v35, %v4546_v21  ;;  %vm5198_vm8 = vmmov %vm5182_vm2  ;;  %v3418_v40 = vld [vmem:[%s5029_s2 + $0xb0] sm:$0xff] }
 0x29a   : > { %3401 = vmatpush1.msk.msra.mxu0 %vm3777_vm4, %v2174_v10  ;;  %2380 = vmatprep.mubr.f32.mxu1 %v5148_v31  ;;  %vm5206_vm14 = vmmov %vm5192_vm1  ;;  %v5233_v5 = vld [vmem:[#allocation12_spill] sm:$0xff] }
 0x29b   : > { %3402 = vmatprep.subr.msk.mxu0 %vm3773_vm3, %v4446_v58  ;;  %v2428_v38 = vpop.permute.xlu1 %2427  ;;  %v3393_v58 = vld [vmem:[%s5029_s2 + $0x68] sm:$0xff]  ;;  %vm5187_vm3 = vmmov %vm5182_vm2  ;;  %v2588_v22 = vsel %vm5206_vm14, %v4638_v59, %v4591_v36 }
 0x29c   : > { %3403 = vmatpush1.msk.msra.mxu0 %vm3777_vm4, %v4449_v19  ;;  %v2432_v43 = vsel %vm5182_vm2, %v4465_v57, %v2428_v38  ;;  %v2448_v60 = vsel %vm5183_vm12, %v2428_v38, %v4465_v57  ;;  %v3409_v19 = vld [vmem:[%s5029_s2 + $0x88] sm:$0xff]  ;;  %v2447_v57 = vsel %vm5187_vm3, %v4500_v56, %v4477_v8  ;;  %vm5189_vm4 = vnez %v5188_v44  ;;  %v3394_v8 = vld [vmem:[%s5029_s2 + $0x70] sm:$0xff]  ;;  %vm5203_vm3 = vmmov %vm5192_vm1 }
 0x29d   : > { %3404 = vmatmul.mubr.msk.f32.vlgmr.msra.gmra.mxu0 %vm5184_vm13, %v3392_v55  ;;  %3412 = vmatmul.mubr.msk.f32.vlgmr.msra.gmra.mxu1 %vm5185_vm10, %v3408_v28  ;;  %v2742_v7 = vpop.permute.xlu0 %2741  ;;  %vm5200_vm12 = vnez %v5199_v30  ;;  %vm5201_vm13 = vmmov %vm5192_vm1  ;;  %v2589_v45 = vsel %vm5203_vm3, %v4576_v2, %v4530_v6  ;;  %v3465_v44 = vld [vmem:[%s5029_s2 + $0x108] sm:$0xff] }
 0x29e   : > { %3420 = vmatprep.subr.msk.mxu0 %vm3817_vm9, %v2448_v60  ;;  %2272 = vmatprep.mubr.f32.mxu0 %v5148_v31  ;;  %vm5202_vm10 = vmmov %vm5194_vm5 }
 0x29f   : > { %3421 = vmatpush1.msk.msra.mxu0 %vm5189_vm4, %v2432_v43  ;;  %v2586_v18 = vpop.permute.xlu1 %2585  ;;  %2386 = vmatprep.mubr.f32.mxu1 %v5148_v31 }
 0x2a0   : > { %v2606_v16 = vsel %vm5190_vm11, %v2586_v18, %v4496_v29  ;;  %3422 = vmatprep.subr.msk.mxu0 %vm3817_vm9, %v2447_v57  ;;  %v2590_v32 = vsel %vm5192_vm1, %v4496_v29, %v2586_v18  ;;  %v2430_v29 = vsel %vm5198_vm8, %v4546_v21, %v4509_v35  ;;  %v2605_v35 = vsel %vm5201_vm13, %v4530_v6, %v4576_v2  ;;  %vm5204_vm11 = vmmov %vm5182_vm2  ;;  %v3395_v21 = vld [vmem:[%s5029_s2 + $0x78] sm:$0xff]  ;;  %v3416_v2 = vld [vmem:[%s5029_s2 + $0xa0] sm:$0xff] }
 0x2a1   : > { %3405 = vmatmul.mubr.msk.f32.gmra.mxu0 %vm5193_vm7, %v3393_v58  ;;  %3413 = vmatmul.mubr.msk.f32.gmra.mxu1 %vm5194_vm5, %v3409_v19  ;;  %v2738_v11 = vpop.permute.xlu0 %2737  ;;  %v2429_v61 = vsel %vm5204_vm11, %v4599_v9, %v4564_v37  ;;  %vm5208_vm7 = vmmov %vm5203_vm3  ;;  %vm5212_vm8 = vcmask 916480   ;;  %v3448_v58 = vld [vmem:[%s5029_s2 + $0xe0] sm:$0xff]  ;;  %v3449_v57 = vld [vmem:[%s5029_s2 + $0xe8] sm:$0xff] }
 0x2a2   : > { %3423 = vmatpush1.msk.msra.mxu0 %vm5189_vm4, %v2431_v12  ;;  %3436 = vmatprep.subr.msk.mxu1 %vm5197_vm0, %v2606_v16  ;;  %v2603_v26 = vsel %vm5208_vm7, %v4611_v33, %v2572_v46  ;;  %vm5213_vm2 = vmmov %vm5212_vm8  ;;  %v3464_v19 = vld [vmem:[%s5029_s2 + $0x100] sm:$0xff]  ;;  %v3450_v18 = vld [vmem:[%s5029_s2 + $0xf0] sm:$0xff] }
 0x2a3   : > { %3424 = vmatprep.subr.msk.mxu0 %vm3817_vm9, %v2446_v48  ;;  %2278 = vmatprep.mubr.f32.mxu0 %v5148_v31  ;;  %v4731_v56 = vpop.permute.xlu1 %2897  ;;  %vm5216_vm13 = vmmov %vm5213_vm2  ;;  %v3466_v16 = vld [vmem:[%s5029_s2 + $0x110] sm:$0xff]  ;;  %v3451_v12 = vld [vmem:[%s5029_s2 + $0xf8] sm:$0xff] }
 0x2a4   : > { %3425 = vmatpush1.msk.msra.mxu0 %vm5189_vm4, %v2430_v29  ;;  %3437 = vmatpush1.msk.msra.mxu1 %vm5200_vm12, %v2590_v32  ;;  %v2763_v0 = vsel %vm5216_vm13, %v4631_v27, %v2738_v11  ;;  %v3467_v32 = vld [vmem:[%s5029_s2 + $0x118] sm:$0xff] }
 0x2a5   : > { %3406 = vmatmul.mubr.msk.f32.gmra.mxu0 %vm5202_vm10, %v3394_v8  ;;  %3426 = vmatprep.subr.msk.mxu0 %vm3817_vm9, %v2445_v54  ;;  %v2900_v20 = vpop.permute.xlu0 %2899  ;;  %vm5205_vm9 = vmmov %vm5192_vm1  ;;  %vm5217_vm10 = vcmp.lt.s32.totalorder %v3738_v17, 15  ;;  %v3435_v17 = vld [vmem:[%s5029_s2 + $0xd8] sm:$0xff] }
 0x2a6   : > { %3438 = vmatprep.subr.msk.mxu1 %vm5197_vm0, %v2605_v35  ;;  %2392 = vmatprep.mubr.f32.mxu1 %v5148_v31  ;;  %v2604_v62 = vsel %vm5205_vm9, %v4591_v36, %v4638_v59  ;;  %vm5207_vm1 = vmmov %vm5194_vm5  ;;  %v3432_v36 = vld [vmem:[%s5029_s2 + $0xc0] sm:$0xff]  ;;  %vm5220_vm9 = vcmask 908288  }
 0x2a7   : > { %3427 = vmatpush1.msk.msra.mxu0 %vm5189_vm4, %v2429_v61  ;;  %3439 = vmatpush1.msk.msra.mxu1 %vm5200_vm12, %v2589_v45  ;;  %v2732_v6 = vpop.permute.xlu1 %2731  ;;  %vm5209_vm4 = vmmov %vm5203_vm3 }
 0x2a8   : > { %3414 = vmatmul.mubr.msk.f32.gmra.mxu1 %vm5207_vm1, %v3410_v51  ;;  %3440 = vmatprep.subr.msk.mxu1 %vm5197_vm0, %v2604_v62  ;;  %v2587_v47 = vsel %vm5209_vm4, %v2572_v46, %v4611_v33  ;;  %vm5210_vm5 = vmmov %vm5207_vm1  ;;  %v3417_v33 = vld [vmem:[%s5029_s2 + $0xa8] sm:$0xff]  ;;  %v3434_v46 = vld [vmem:[%s5029_s2 + $0xd0] sm:$0xff] }
 0x2a9   : > { %2284 = vmatprep.mubr.f32.mxu0 %v5148_v31  ;;  %3441 = vmatpush1.msk.msra.mxu1 %vm5200_vm12, %v2588_v22  ;;  %v2734_v37 = vpop.permute.xlu0 %2733  ;;  %vm5211_vm15 = vmmov %vm5207_vm1 }
 0x2aa   : > { %3407 = vmatmul.mubr.msk.f32.gmra.mxu0 %vm5210_vm5, %v3395_v21  ;;  %3442 = vmatprep.subr.msk.mxu1 %vm5197_vm0, %v2603_v26  ;;  %vm5214_vm0 = vcmp.lt.s32.totalorder %v3736_v14, 15  ;;  %vm5218_vm3 = vmmov %vm5213_vm2  ;;  %v3419_v14 = vld [vmem:[%s5029_s2 + $0xb8] sm:$0xff] }
 0x2ab   : > { %2398 = vmatprep.mubr.f32.mxu1 %v5148_v31  ;;  %3443 = vmatpush1.msk.msra.mxu1 %vm5200_vm12, %v2587_v47  ;;  %v2744_v1 = vpop.permute.xlu1 %2743  ;;  %vm5215_vm12 = vmmov %vm5207_vm1  ;;  %v2747_v13 = vsel %vm5218_vm3, %v2738_v11, %v4631_v27  ;;  %vm5234_vm3 = vnez %v5233_v5 }
 0x2ac   : > { %3415 = vmatmul.mubr.msk.f32.gmra.mxu1 %vm5211_vm15, %v3411_v25  ;;  %2538 = vmatprep.mubr.f32.mxu0 %v5148_v31  ;;  %v2748_v24 = vsel %vm5212_vm8, %v2742_v7, %v2744_v1  ;;  %v2764_v23 = vsel %vm5213_vm2, %v2744_v1, %v2742_v7  ;;  %vm5219_vm11 = vmmov %vm5207_vm1 }
 0x2ad   : > { %2696 = vmatprep.mubr.f32.mxu1 %v5148_v31  ;;  %3452 = vmatprep.subr.msk.mxu0 %vm5214_vm0, %v2764_v23  ;;  %v2896_v9 = vpop.permute.xlu0 %2895  ;;  %vm5221_vm14 = vmmov %vm5214_vm0 }
 0x2ae   : > { %3428 = vmatmul.mubr.msk.f32.vlgmr.msra.gmra.mxu0 %vm5215_vm12, %v3416_v2  ;;  %vm5222_vm1 = vmmov %vm5213_vm2 }
 0x2af   : > { %2544 = vmatprep.mubr.f32.mxu0 %v5148_v31  ;;  %3453 = vmatpush1.msk.msra.mxu0 %vm5217_vm10, %v2748_v24  ;;  %v2902_v53 = vpop.permute.xlu1 %2901  ;;  %v2762_v34 = vsel %vm5222_vm1, %v4654_v4, %v2734_v37  ;;  %vm5223_vm7 = vmmov %vm5217_vm10 }
 0x2b0   : > { %3444 = vmatmul.mubr.msk.f32.vlgmr.msra.gmra.mxu1 %vm5219_vm11, %v3432_v36  ;;  %v2922_v63 = vsel %vm5220_vm9, %v2902_v53, %v2900_v20  ;;  %3454 = vmatprep.subr.msk.mxu0 %vm5221_vm14, %v2763_v0  ;;  %vm5224_vm4 = vmmov %vm5220_vm9 }
 0x2b1   : > { %2702 = vmatprep.mubr.f32.mxu1 %v5148_v31  ;;  %3455 = vmatpush1.msk.msra.mxu0 %vm5223_vm7, %v2747_v13  ;;  %v2730_v39 = vpop.permute.xlu0 %2729  ;;  %v2906_v27 = vsel %vm5224_vm4, %v2900_v20, %v2902_v53  ;;  %vm5225_vm15 = vmmov %vm5214_vm0 }
 0x2b2   : > { %3429 = vmatmul.mubr.msk.f32.gmra.mxu0 %vm5210_vm5, %v3417_v33  ;;  %3456 = vmatprep.subr.msk.mxu0 %vm5225_vm15, %v2762_v34  ;;  %vm5226_vm8 = vmmov %vm5222_vm1 }
 0x2b3   : > { %v2761_v50 = vsel %vm5226_vm8, %v2732_v6, %v2730_v39  ;;  %vm5227_vm2 = vmmov %vm5222_vm1  ;;  %3468 = vmatprep.subr.msk.mxu1 %vm4122_vm6, %v2922_v63  ;;  %2550 = vmatprep.mubr.f32.mxu0 %v5148_v31  ;;  %v2894_v41 = vpop.permute.xlu1 %2893 }
 0x2b4   : > { %v2746_v59 = vsel %vm5227_vm2, %v2734_v37, %v4654_v4  ;;  %vm5229_vm0 = vmmov %vm5210_vm5  ;;  %3469 = vmatpush1.msk.msra.mxu1 %vm5234_vm3, %v2906_v27 }
 0x2b5   : > { %3445 = vmatmul.mubr.msk.f32.gmra.mxu1 %vm5229_vm0, %v3433_v52  ;;  %vm5230_vm12 = vmmov %vm5222_vm1  ;;  %v2892_v10 = vpop.permute.xlu0 %2891 }
 0x2b6   : > { %v2745_v3 = vsel %vm5230_vm12, %v2730_v39, %v2732_v6  ;;  %vm5231_vm13 = vmmov %vm5223_vm7  ;;  %2708 = vmatprep.mubr.f32.mxu1 %v5148_v31 }
 0x2b7   : > { %3457 = vmatpush1.msk.msra.mxu0 %vm5231_vm13, %v2746_v59  ;;  %vm5232_vm10 = vmmov %vm5224_vm4  ;;  %v2890_v43 = vpop.permute.xlu1 %2889 }
 0x2b8   : > { %v2921_v4 = vsel %vm5232_vm10, %v4731_v56, %v2896_v9  ;;  %vm5235_vm11 = vmmov %vm5221_vm14 }
 0x2b9   : > { %3458 = vmatprep.subr.msk.mxu0 %vm5235_vm11, %v2761_v50  ;;  %vm5236_vm9 = vmmov %vm5229_vm0  ;;  %3470 = vmatprep.subr.msk.mxu1 %vm4122_vm6, %v2921_v4  ;;  %v2888_v60 = vpop.permute.xlu0 %2887 }
 0x2ba   : > { %3430 = vmatmul.mubr.msk.f32.gmra.mxu0 %vm5236_vm9, %v3418_v40  ;;  %vm5237_vm14 = vmmov %vm5224_vm4 }
 0x2bb   : > { %v2920_v55 = vsel %vm5237_vm14, %v2894_v41, %v2892_v10  ;;  %vm5238_vm1 = vmmov %vm5224_vm4  ;;  %3459 = vmatpush1.msk.msra.mxu0 %vm5223_vm7, %v2745_v3  ;;  %2556 = vmatprep.mubr.f32.mxu0 %v5148_v31 }
 0x2bc   : > { %v2905_v28 = vsel %vm5238_vm1, %v2896_v9, %v4731_v56  ;;  %vm5239_vm4 = vmmov %vm5238_vm1 }
 0x2bd   : > { %3471 = vmatpush1.msk.msra.mxu1 %vm5234_vm3, %v2905_v28  ;;  %v2904_v38 = vsel %vm5239_vm4, %v2892_v10, %v2894_v41  ;;  %vm5240_vm5 = vmmov %vm5229_vm0 }
 0x2be   : > { %3446 = vmatmul.mubr.msk.f32.gmra.mxu1 %vm5240_vm5, %v3434_v46  ;;  %3472 = vmatprep.subr.msk.mxu1 %vm4122_vm6, %v2920_v55  ;;  %vm5241_vm15 = vmmov %vm5229_vm0 }
 0x2bf   : > { %3431 = vmatmul.mubr.msk.f32.gmra.mxu0 %vm5241_vm15, %v3419_v14  ;;  %2714 = vmatprep.mubr.f32.mxu1 %v5148_v31  ;;  %vm5242_vm8 = vmmov %vm5238_vm1 }
 0x2c0   : > { %v2919_v7 = vsel %vm5242_vm8, %v2890_v43, %v2888_v60  ;;  %3473 = vmatpush1.msk.msra.mxu1 %vm5234_vm3, %v2904_v38  ;;  %vm5243_vm2 = vmmov %vm5238_vm1  ;;  %2854 = vmatprep.mubr.f32.mxu0 %v5148_v31  ;;  %vm3073_vm1 = vcmask 15360  }
 0x2c1   : > { %v2903_v15 = vsel %vm5243_vm2, %v2888_v60, %v2890_v43  ;;  %3474 = vmatprep.subr.msk.mxu1 %vm4122_vm6, %v2919_v7  ;;  %vm5244_vm12 = vmmov %vm5229_vm0 }
 0x2c2   : > { %3447 = vmatmul.mubr.msk.f32.gmra.mxu1 %vm5229_vm0, %v3435_v17  ;;  %vm5245_vm6 = vmmov %vm5229_vm0 }
 0x2c3   : > { %3460 = vmatmul.mubr.msk.f32.vlgmr.msra.gmra.mxu0 %vm5244_vm12, %v3448_v58  ;;  %3475 = vmatpush1.msk.msra.mxu1 %vm5234_vm3, %v2903_v15  ;;  %vm5246_vm13 = vmmov %vm5229_vm0 }
 0x2c4   : > { %3012 = vmatprep.mubr.f32.mxu1 %v5148_v31  ;;  %2860 = vmatprep.mubr.f32.mxu0 %v5148_v31  ;;  %vm5247_vm10 = vmmov %vm5229_vm0 }
 0x2c5   : > { %vm5248_vm3 = vmmov %vm5229_vm0 }
 0x2c6   : > { %3476 = vmatmul.mubr.msk.f32.vlgmr.msra.gmra.mxu1 %vm5245_vm6, %v3464_v19  ;;  %vm5249_vm11 = vmmov %vm5229_vm0 }
 0x2c7   : > { %3461 = vmatmul.mubr.msk.f32.gmra.mxu0 %vm5246_vm13, %v3449_v57  ;;  %3018 = vmatprep.mubr.f32.mxu1 %v5148_v31  ;;  %vm5250_vm9 = vmmov %vm5229_vm0 }
 0x2c8   : > { %2866 = vmatprep.mubr.f32.mxu0 %v5148_v31  ;;  %vm5251_vm14 = vmmov %vm5229_vm0 }
 0x2ca   : > { %3477 = vmatmul.mubr.msk.f32.gmra.mxu1 %vm5247_vm10, %v3465_v44 }
 0x2cb   : > { %3462 = vmatmul.mubr.msk.f32.gmra.mxu0 %vm5248_vm3, %v3450_v18  ;;  %3024 = vmatprep.mubr.f32.mxu1 %v5148_v31 }
 0x2cc   : > { %2872 = vmatprep.mubr.f32.mxu0 %v5148_v31 }
 0x2ce   : > { %3478 = vmatmul.mubr.msk.f32.gmra.mxu1 %vm5249_vm11, %v3466_v16 }
 0x2cf   : > { %3463 = vmatmul.mubr.msk.f32.gmra.mxu0 %vm5250_vm9, %v3451_v12  ;;  %3030 = vmatprep.mubr.f32.mxu1 %v5148_v31 }
 0x2d2   : > { %3479 = vmatmul.mubr.msk.f32.gmra.mxu1 %vm5251_vm14, %v3467_v32 }
 0x33b   : > { %v1859_v11 = vpop.f32.mrf.mxu1 }
 0x33d   : > { %v1861_v48 = vpop.f32.mrf.mxu1 }
 0x33f   : > { %v1865_v49 = vpop.f32.mrf.mxu1 }
 0x341   : > { %v1867_v8 = vpop.f32.mrf.mxu1 }
 0x343   : > { %v1871_v29 = vpop.f32.mrf.mxu1 }
 0x345   : > { %v1873_v56 = vpop.f32.mrf.mxu1 }
 0x348   : > { %v4925_v54 = vpop.f32.mrf.mxu1  ;;  %v1960_v30 = vpop.f32.mrf.mxu0 }
 0x349   : > { %v1961_v40 = vadd.f32 %v1960_v30, %v1859_v11 }
 0x34a   : > { %v4927_v35 = vpop.f32.mrf.mxu1  ;;  %v1962_v51 = vpop.f32.mrf.mxu0 }
 0x34b   : > { %v1963_v5 = vadd.f32 %v1962_v51, %v1861_v48 }
 0x34c   : > { %v1966_v20 = vpop.f32.mrf.mxu0 }
 0x34d   : > { %v2110_v31 = vpop.f32.mrf.mxu1  ;;  %v1967_v14 = vadd.f32 %v1966_v20, %v1865_v49 }
 0x34e   : > { %v1968_v45 = vpop.f32.mrf.mxu0  ;;  %v2133_v10 = vadd.f32 %v2110_v31, %v1961_v40 }
 0x34f   : > { %v2112_v61 = vpop.f32.mrf.mxu1  ;;  %v1969_v17 = vadd.f32 %v1968_v45, %v1867_v8 }
 0x350   : > { %v1972_v62 = vpop.f32.mrf.mxu0  ;;  %v2134_v28 = vadd.f32 %v2112_v61, %v1963_v5 }
 0x351   : > { %v2116_v6 = vpop.f32.mrf.mxu1  ;;  %v1973_v44 = vadd.f32 %v1972_v62, %v1871_v29 }
 0x352   : > { %v1974_v21 = vpop.f32.mrf.mxu0  ;;  %v2135_v15 = vadd.f32 %v2116_v6, %v1967_v14 }
 0x353   : > { %v2118_v22 = vpop.f32.mrf.mxu1  ;;  %v1975_v32 = vadd.f32 %v1974_v21, %v1873_v56 }
 0x354   : > { %v1978_v25 = vpop.f32.mrf.mxu0  ;;  %v2136_v57 = vadd.f32 %v2118_v22, %v1969_v17 }
 0x355   : > { %v2122_v26 = vpop.f32.mrf.mxu1  ;;  %v1979_v8 = vadd.f32 %v1978_v25, %v4925_v54 }
 0x356   : > { %v1980_v1 = vpop.f32.mrf.mxu0  ;;  %v2137_v51 = vadd.f32 %v2122_v26, %v1973_v44 }
 0x357   : > { %v2124_v37 = vpop.f32.mrf.mxu1  ;;  %v1981_v29 = vadd.f32 %v1980_v1, %v4927_v35 }
 0x358   : > { %v2138_v20 = vadd.f32 %v2124_v37, %v1975_v32 }
 0x359   : > { %v2128_v47 = vpop.f32.mrf.mxu1 }
 0x35a   : > { %v2139_v56 = vadd.f32 %v2128_v47, %v1979_v8 }
 0x35b   : > { %v2130_v2 = vpop.f32.mrf.mxu1 }
 0x35c   : > { %v2140_v26 = vadd.f32 %v2130_v2, %v1981_v29  ;;  %v3046_v29 = vld [vmem:[%s5030_s3 + $0x8] sm:$0xff] }
 0x35d   : > { %v2268_v24 = vpop.f32.mrf.mxu0  ;;  %v2382_v23 = vpop.f32.mrf.mxu1 }
 0x35e   : > { %v2291_v38 = vadd.f32 %v2268_v24, %v2133_v10 }
 0x35f   : > { %v2270_v36 = vpop.f32.mrf.mxu0  ;;  %v2384_v9 = vpop.f32.mrf.mxu1 }
 0x360   : > { %v2292_v7 = vadd.f32 %v2270_v36, %v2134_v28  ;;  %v2405_v18 = vadd.f32 %v2382_v23, %v2291_v38 }
 0x361   : > { %v2274_v0 = vpop.f32.mrf.mxu0  ;;  %v2388_v53 = vpop.f32.mrf.mxu1 }
 0x362   : > { %v2293_v16 = vadd.f32 %v2274_v0, %v2135_v15  ;;  %v2406_v11 = vadd.f32 %v2384_v9, %v2292_v7 }
 0x363   : > { %v2276_v33 = vpop.f32.mrf.mxu0  ;;  %v2390_v13 = vpop.f32.mrf.mxu1 }
 0x364   : > { %v2294_v48 = vadd.f32 %v2276_v33, %v2136_v57  ;;  %v2407_v45 = vadd.f32 %v2388_v53, %v2293_v16 }
 0x365   : > { %v2280_v63 = vpop.f32.mrf.mxu0 }
 0x366   : > { %v2295_v6 = vadd.f32 %v2280_v63, %v2137_v51  ;;  %v2408_v62 = vadd.f32 %v2390_v13, %v2294_v48 }
 0x367   : > { %v2282_v34 = vpop.f32.mrf.mxu0 }
 0x368   : > { %v2394_v52 = vpop.f32.mrf.mxu1  ;;  %v2296_v22 = vadd.f32 %v2282_v34, %v2138_v20 }
 0x369   : > { %v2409_v40 = vadd.f32 %v2394_v52, %v2295_v6 }
 0x36a   : > { %v2286_v39 = vpop.f32.mrf.mxu0  ;;  %v2396_v27 = vpop.f32.mrf.mxu1 }
 0x36b   : > { %v2410_v25 = vadd.f32 %v2396_v27, %v2296_v22 }
 0x36c   : > { %v2288_v50 = vpop.f32.mrf.mxu0  ;;  %v4929_v59 = vpop.f32.mrf.mxu1 }
 0x36d   : > { %v2298_v53 = vadd.f32 %v2288_v50, %v2140_v26 }
 0x36e   : > { %v4931_v42 = vpop.f32.mrf.mxu1  ;;  %v2540_v41 = vpop.f32.mrf.mxu0 }
 0x36f   : > { %v2563_v31 = vadd.f32 %v2540_v41, %v2405_v18 }
 0x370   : > { %v2542_v3 = vpop.f32.mrf.mxu0  ;;  %v2698_v4 = vpop.f32.mrf.mxu1 }
 0x371   : > { %v2564_v61 = vadd.f32 %v2542_v3, %v2406_v11  ;;  %v2721_v21 = vadd.f32 %v2698_v4, %v2563_v31  ;;  %v2297_v3 = vadd.f32 %v2286_v39, %v2139_v56  ;;  %v2412_v39 = vadd.f32 %v4931_v42, %v2298_v53  ;;  %v3045_v56 = vld [vmem:[%s5030_s3] sm:$0xff] }
 0x372   : > { %v2546_v46 = vpop.f32.mrf.mxu0  ;;  %v2700_v55 = vpop.f32.mrf.mxu1 }
 0x373   : > { %v2565_v9 = vadd.f32 %v2546_v46, %v2407_v45  ;;  %v2722_v33 = vadd.f32 %v2700_v55, %v2564_v61  ;;  %v2411_v46 = vadd.f32 %v4929_v59, %v2297_v3 }
 0x374   : > { %v2548_v43 = vpop.f32.mrf.mxu0 }
 0x375   : > { %v2704_v60 = vpop.f32.mrf.mxu1  ;;  %v2566_v41 = vadd.f32 %v2548_v43, %v2408_v62 }
 0x376   : > { %v2723_v35 = vadd.f32 %v2704_v60, %v2565_v9  ;;  %v3047_v9 = vld [vmem:[%s5030_s3 + $0x10] sm:$0xff] }
 0x377   : > { %v2706_v19 = vpop.f32.mrf.mxu1 }
 0x378   : > { %v2724_v34 = vadd.f32 %v2706_v19, %v2566_v41 }
 0x37a   : > { %v2552_v58 = vpop.f32.mrf.mxu0 }
 0x37b   : > { %v2567_v1 = vadd.f32 %v2552_v58, %v2409_v40  ;;  %v3048_v40 = vld [vmem:[%s5030_s3 + $0x18] sm:$0xff] }
 0x37c   : > { %v2554_v12 = vpop.f32.mrf.mxu0 }
 0x37d   : > { %v2568_v47 = vadd.f32 %v2554_v12, %v2410_v25 }
 0x37e   : > { %v2710_v30 = vpop.f32.mrf.mxu1 }
 0x37f   : > { %v2558_v49 = vpop.f32.mrf.mxu0  ;;  %v2725_v14 = vadd.f32 %v2710_v30, %v2567_v1 }
 0x380   : > { %v2712_v24 = vpop.f32.mrf.mxu1  ;;  %v2569_v38 = vadd.f32 %v2558_v49, %v2411_v46 }
 0x381   : > { %v2560_v36 = vpop.f32.mrf.mxu0  ;;  %v2726_v17 = vadd.f32 %v2712_v24, %v2568_v47 }
 0x382   : > { %v2716_v23 = vpop.f32.mrf.mxu1  ;;  %v2570_v7 = vadd.f32 %v2560_v36, %v2412_v39  ;;  %v3049_v39 = vld [vmem:[%s5031_s4] sm:$0xff] }
 0x383   : > { %v2856_v0 = vpop.f32.mrf.mxu0  ;;  %v2727_v18 = vadd.f32 %v2716_v23, %v2569_v38 }
 0x384   : > { %v2718_v37 = vpop.f32.mrf.mxu1  ;;  %v2879_v5 = vadd.f32 %v2856_v0, %v2721_v21 }
 0x385   : > { %v2858_v54 = vpop.f32.mrf.mxu0  ;;  %v2728_v32 = vadd.f32 %v2718_v37, %v2570_v7 }
 0x386   : > { %v2880_v63 = vadd.f32 %v2858_v54, %v2722_v33  ;;  %v3014_v10 = vpop.f32.mrf.mxu1 }
 0x387   : > { %v2862_v13 = vpop.f32.mrf.mxu0  ;;  %v4936_v2 = vadd.f32 %v3014_v10, %v2879_v5 }
 0x388   : > { %v3016_v4 = vpop.f32.mrf.mxu1  ;;  %v2881_v55 = vadd.f32 %v2862_v13, %v2723_v35 }
 0x389   : > { %v4938_v28 = vadd.f32 %v3016_v4, %v2880_v63  ;;  %v2864_v52 = vpop.f32.mrf.mxu0 }
 0x38a   : > { %v2882_v27 = vadd.f32 %v2864_v52, %v2724_v34  ;;  %v3020_v50 = vpop.f32.mrf.mxu1  ;;  %v3050_v52 = vld [vmem:[%s5031_s4 + $0x8] sm:$0xff] }
 0x38b   : > { %v3053_v43 = vadd.f32 %v4938_v28, %v4936_v2  ;;  %v2868_v60 = vpop.f32.mrf.mxu0  ;;  %v4943_v59 = vadd.f32 %v3020_v50, %v2881_v55  ;;  %v3052_v50 = vld [vmem:[%s5031_s4 + $0x18] sm:$0xff] }
 0x38c   : > { %v3022_v15 = vpop.f32.mrf.mxu1  ;;  %v2883_v58 = vadd.f32 %v2868_v60, %v2725_v14  ;;  %v3051_v14 = vld [vmem:[%s5031_s4 + $0x10] sm:$0xff] }
 0x38d   : > { %v4945_v19 = vadd.f32 %v3022_v15, %v2882_v27  ;;  %3054 = vadd.xlane.f32.xlu0 %v3053_v43  ;;  %v2870_v57 = vpop.f32.mrf.mxu0 }
 0x38e   : > { %v2884_v44 = vadd.f32 %v2870_v57, %v2726_v17  ;;  %v3026_v42 = vpop.f32.mrf.mxu1 }
 0x38f   : > { %v3056_v16 = vadd.f32 %v4945_v19, %v4943_v59  ;;  %v2874_v12 = vpop.f32.mrf.mxu0  ;;  %v4949_v48 = vadd.f32 %v3026_v42, %v2883_v58 }
 0x390   : > { %v3028_v11 = vpop.f32.mrf.mxu1  ;;  %v2885_v30 = vadd.f32 %v2874_v12, %v2727_v18 }
 0x391   : > { %v4951_v51 = vadd.f32 %v3028_v11, %v2884_v44  ;;  %3057 = vadd.xlane.f32.xlu1 %v3056_v16  ;;  %v2876_v31 = vpop.f32.mrf.mxu0 }
 0x392   : > { %v2886_v49 = vadd.f32 %v2876_v31, %v2728_v32  ;;  %v3032_v20 = vpop.f32.mrf.mxu1 }
 0x393   : > { %v3059_v61 = vadd.f32 %v4951_v51, %v4949_v48  ;;  %v4955_v8 = vadd.f32 %v3032_v20, %v2885_v30 }
 0x394   : > { %v3034_v24 = vpop.f32.mrf.mxu1 }
 0x395   : > { %v4957_v45 = vadd.f32 %v3034_v24, %v2886_v49  ;;  %3060 = vadd.xlane.f32.xlu0 %v3059_v61 }
 0x397   : > { %v3062_v6 = vadd.f32 %v4957_v45, %v4955_v8 }
 0x399   : > { %3063 = vadd.xlane.f32.xlu0 %v3062_v6 }
 0x416   : > { %v3055_v36 = vpop.xlane.xlu0 %3054 }
 0x417   : > { %v3065_v22 = vmul.f32 0.00390625, %v3055_v36 }
 0x419   : > { %v3069_v26 = vmul.f32 %v3065_v22, %v3045_v56 }
 0x41a   : > { %v3058_v62 = vpop.xlane.xlu1 %3057 }
 0x41b   : > { %v3066_v23 = vmul.f32 0.00390625, %v3058_v62  ;;  %v3074_v5 = vsel %vm3073_vm1, %v3069_v26, 0.0 }
 0x41d   : > { %v3070_v21 = vmul.f32 %v3066_v23, %v3046_v29 }
 0x41e   : > { %v3061_v0 = vpop.xlane.xlu0 %3060 }
 0x41f   : > { %v3067_v33 = vmul.f32 0.00390625, %v3061_v0  ;;  %v3075_v41 = vsel %vm3073_vm1, %v3070_v21, 0.0 }
 0x420   : > { %v3076_v53 = vadd.f32 %v3075_v41, %v3074_v5  ;;  %v3519_v5 = vld [vmem:[%s3588_s23] sm:$0xff] }
 0x421   : > { %v3071_v37 = vmul.f32 %v3067_v33, %v3047_v9 }
 0x422   : > { %v3064_v3 = vpop.xlane.xlu0 %3063 }
 0x423   : > { %v3077_v54 = vsel %vm3073_vm1, %v3071_v37, 0.0  ;;  %v3068_v25 = vmul.f32 0.00390625, %v3064_v3  ;;  %v3517_v37 = vld [vmem:[%s3588_s23 + $0x10] sm:$0xff]  ;;  %v3518_v3 = vld [vmem:[%s3588_s23 + $0x18] sm:$0xff] }
 0x424   : > { %v3078_v10 = vadd.f32 %v3077_v54, %v3076_v53 }
 0x425   : > { %v3072_v63 = vmul.f32 %v3068_v25, %v3048_v40  ;;  %v3520_v25 = vld [vmem:[%s3588_s23 + $0x8] sm:$0xff] }
 0x427   : > { %v3079_v35 = vsel %vm3073_vm1, %v3072_v63, 0.0 }
 0x428   : > { %v3080_v1 = vadd.f32 %v3079_v35, %v3078_v10 }
 0x42a   : > { %v3081_v13 = vrot.slane %v3080_v1, 4 }
 0x42c   : > { %v3082_v34 = vadd.f32 %v3081_v13, %v3080_v1  ;;  %v3521_v1 = vld [vmem:[%s3588_s23 + $0x30] sm:$0xff] }
 0x42e   : > { %v3083_v47 = vrot.slane %v3082_v34, 2 }
 0x430   : > { %v3084_v4 = vadd.f32 %v3083_v47, %v3082_v34  ;;  %v3522_v34 = vld [vmem:[%s3588_s23 + $0x38] sm:$0xff] }
 0x432   : > { %v3085_v46 = vrot.slane %v3084_v4, 1 }
 0x434   : > { %v3086_v55 = vadd.f32 %v3085_v46, %v3084_v4  ;;  %v3523_v4 = vld [vmem:[%s3588_s23 + $0x20] sm:$0xff] }
 0x436   : > { %v3087_v27 = vmax.f32 %v3086_v55, 0.0  ;;  %v3524_v55 = vld [vmem:[%s3588_s23 + $0x28] sm:$0xff] }
 0x438   : > { %v3089_v38 = vmul.f32 %v3087_v27, %v3050_v52  ;;  %v3088_v43 = vmul.f32 %v3087_v27, %v3049_v39  ;;  %v3091_v7 = vmul.f32 %v3087_v27, %v3052_v50  ;;  %v3090_v15 = vmul.f32 %v3087_v27, %v3051_v14 }
 0x43a   : > { %v3095_v60 = vsel %vm3073_vm1, %v3089_v38, 0.0  ;;  %v3092_v17 = vsel %vm3073_vm1, %v3088_v43, 0.0  ;;  %v3101_v58 = vsel %vm3073_vm1, %v3091_v7, 0.0  ;;  %v3098_v57 = vsel %vm3073_vm1, %v3090_v15, 0.0 }
 0x43b   : > { %3096 = vadd.xlane.f32.xlu0 %v3095_v60  ;;  %3093 = vadd.xlane.f32.xlu1 %v3092_v17 }
 0x43f   : > { %3102 = vadd.xlane.f32.xlu0 %v3101_v58  ;;  %3099 = vadd.xlane.f32.xlu1 %v3098_v57 }
 0x4c4   : > { %v3097_v44 = vpop.xlane.xlu0 %3096  ;;  %v3094_v42 = vpop.xlane.xlu1 %3093 }
 0x4c5   : > { %v3105_v18 = vsub.f32 0.0, %v3097_v44  ;;  %v3104_v16 = vsub.f32 0.0, %v3094_v42 }
 0x4c7   : > { %v3110_v12 = vmul.f32 1.442695, %v3105_v18  ;;  %v3108_v32 = vmul.f32 1.442695, %v3104_v16 }
 0x4c8   : > { %v3103_v11 = vpop.xlane.xlu0 %3102  ;;  %v3100_v30 = vpop.xlane.xlu1 %3099 }
 0x4c9   : > { %3501 = vpow2.f32 %v3110_v12  ;;  %v3107_v31 = vsub.f32 0.0, %v3103_v11  ;;  %v3106_v49 = vsub.f32 0.0, %v3100_v30 }
 0x4ca   : > { %3503 = vpow2.f32 %v3108_v32 }
 0x4cb   : > { %v3114_v20 = vmul.f32 1.442695, %v3107_v31  ;;  %v3112_v61 = vmul.f32 1.442695, %v3106_v49 }
 0x4cd   : > { %3505 = vpow2.f32 %v3114_v20 }
 0x4ce   : > { %3507 = vpow2.f32 %v3112_v61 }
 0x4d6   : > { %v3502_v24 = vpop.eup %3501 }
 0x4d7   : > { %v3504_v6 = vpop.eup %3503  ;;  %v3117_v36 = vadd.f32 1.0, %v3502_v24 }
 0x4d8   : > { %v3116_v29 = vadd.f32 1.0, %v3504_v6 }
 0x4d9   : > { %3509 = vrcp.f32 %v3117_v36 }
 0x4da   : > { %v3506_v62 = vpop.eup %3505  ;;  %3511 = vrcp.f32 %v3116_v29 }
 0x4db   : > { %v3508_v22 = vpop.eup %3507  ;;  %v3119_v23 = vadd.f32 1.0, %v3506_v62 }
 0x4dc   : > { %v3118_v56 = vadd.f32 1.0, %v3508_v22 }
 0x4dd   : > { %3513 = vrcp.f32 %v3119_v23 }
 0x4de   : > { %3515 = vrcp.f32 %v3118_v56 }
 0x4e6   : > { %v3510_v21 = vpop.eup %3509 }
 0x4e7   : > { %v3512_v9 = vpop.eup %3511  ;;  %v3130_v0 = vmul.f32 %v3510_v21, %v4943_v59  ;;  %v3131_v26 = vmul.f32 %v3510_v21, %v4945_v19 }
 0x4e8   : > { %v3128_v33 = vmul.f32 %v3512_v9, %v4936_v2  ;;  %v3129_v41 = vmul.f32 %v3512_v9, %v4938_v28 }
 0x4e9   : > { %v3138_v40 = vadd.f32 %v3517_v37, %v3130_v0  ;;  %v3139_v59 = vadd.f32 %v3518_v3, %v3131_v26 }
 0x4ea   : > { %v3514_v19 = vpop.eup %3513  ;;  %v3136_v54 = vadd.f32 %v3519_v5, %v3128_v33  ;;  %v3137_v53 = vadd.f32 %v3520_v25, %v3129_v41 }
 0x4eb   : > { %v3516_v63 = vpop.eup %3515  ;;  %3146 = vst [vmem:[%s5000_s30 + $0x10] sm:$0xff] %v3138_v40  ;;  %3147 = vst [vmem:[%s5000_s30 + $0x18] sm:$0xff] %v3139_v59  ;;  %v3134_v2 = vmul.f32 %v3514_v19, %v4955_v8  ;;  %v3135_v28 = vmul.f32 %v3514_v19, %v4957_v45 }
 0x4ec   : > { %3144 = vst [vmem:[%s5000_s30] sm:$0xff] %v3136_v54  ;;  %3145 = vst [vmem:[%s5000_s30 + $0x8] sm:$0xff] %v3137_v53  ;;  %v3132_v10 = vmul.f32 %v3516_v63, %v4949_v48  ;;  %v3133_v35 = vmul.f32 %v3516_v63, %v4951_v51 }
 0x4ed   : > { %v3142_v13 = vadd.f32 %v3521_v1, %v3134_v2  ;;  %v3143_v47 = vadd.f32 %v3522_v34, %v3135_v28 }
 0x4ee   : > { %v3140_v46 = vadd.f32 %v3523_v4, %v3132_v10  ;;  %v3141_v52 = vadd.f32 %v3524_v55, %v3133_v35 }
 0x4ef   : > { %3150 = vst [vmem:[%s5000_s30 + $0x30] sm:$0xff] %v3142_v13  ;;  %3151 = vst [vmem:[%s5000_s30 + $0x38] sm:$0xff] %v3143_v47 }
 0x4f0   : > { %3148 = vst [vmem:[%s5000_s30 + $0x20] sm:$0xff] %v3140_v46  ;;  %3149 = vst [vmem:[%s5000_s30 + $0x28] sm:$0xff] %v3141_v52 }
 0x4f1 PF: > { %s15_s18 = sadd.s32 1, %s3531_s18  }
 0x4f2   : > { %p12_p4 = scmp.ge.s32.totalorder %s15_s18, 4  }
 0x4f4   :  { %14 = sbr.rel (!%p12_p4) target bundleno = 1 (0x1), region = 86 }

</bundles_post_ra>
